<compile_context>
chip_gen: v6e
topology: v6e:2x2x1
jax: 0.10.0
libtpu: 0.0.40
codegen_flags: <defaults>
</compile_context>

<pallas_src>
import jax
import jax.numpy as jnp
from jax.experimental import pallas as pl
from jax.experimental.pallas import tpu as pltpu

P_DROP = 0.5


def cat_dropout_conv1x1_kernel(x1_ref, x2_ref, m1_ref, m2_ref,
                               w1_ref, w2_ref, b_ref, o_ref):
    # Dropout applied per concat-half; the 1/(1-p) scale is folded into W.
    xd1 = x1_ref[...] * m1_ref[...]          # (C1, HWp) bf16
    xd2 = x2_ref[...] * m2_ref[...]          # (C2, HWp) bf16
    # 1x1 conv == Out(Cout, HW) = W(Cout, Cin) @ X(Cin, HW), split over the
    # two concat halves so no (Cin, HW) temporary is materialized.
    acc = jnp.dot(w1_ref[...], xd1, preferred_element_type=jnp.float32)
    acc = acc + jnp.dot(w2_ref[...], xd2, preferred_element_type=jnp.float32)
    o_ref[...] = acc + b_ref[...]            # (Cout_blk, 1) bias broadcast over lanes


def cat_dropout_conv2d(x58, x60, w, b, key, *, cout_block=512):
    """x58, x60: (1, C, H, W) f32; w: (Cout, Cin, 1, 1); b: (Cout,). Returns NCHW f32."""
    n, c1, h, wd = x58.shape
    c2 = x60.shape[1]
    assert n == 1, "wrapper assumes batch 1 (as in the reference module)"
    cin = c1 + c2
    cout = w.shape[0]
    hw = h * wd

    hwp = ((hw + 127) // 128) * 128                 # lane-dense output columns
    coutp = pl.cdiv(cout, cout_block) * cout_block  # sublane/grid-aligned rows

    # NCHW (N=1) -> (C, HW): pure reshape, no transpose / HBM relayout.
    x1 = x58.reshape(c1, hw)
    x2 = x60.reshape(c2, hw)
    x1p = jnp.pad(x1, ((0, 0), (0, hwp - hw))).astype(jnp.bfloat16)
    x2p = jnp.pad(x2, ((0, 0), (0, hwp - hw))).astype(jnp.bfloat16)

    # Dropout keep mask (Bernoulli(1-p)); scale folded into the weights below.
    # TODO(synk): PyTorch's exact dropout RNG stream cannot be reproduced on TPU;
    #             iid Bernoulli(0.5) mask + 2x scaling semantics are preserved.
    k1m, k2m = jax.random.split(key)
    m1 = jax.random.bernoulli(k1m, 1.0 - P_DROP, (c1, hwp)).astype(jnp.bfloat16)
    m2 = jax.random.bernoulli(k2m, 1.0 - P_DROP, (c2, hwp)).astype(jnp.bfloat16)

    # (Cout, Cin, 1, 1) -> (Cout, Cin); fold dropout scale; zero-pad Cout; bf16.
    wmat = w.reshape(cout, cin).astype(jnp.float32) * (1.0 / (1.0 - P_DROP))
    wmat = jnp.pad(wmat, ((0, coutp - cout), (0, 0)))
    w1 = wmat[:, :c1].astype(jnp.bfloat16)
    w2 = wmat[:, c1:].astype(jnp.bfloat16)
    bcol = jnp.pad(b.astype(jnp.float32), (0, coutp - cout)).reshape(coutp, 1)

    grid = (coutp // cout_block,)
    out = pl.pallas_call(
        cat_dropout_conv1x1_kernel,
        out_shape=jax.ShapeDtypeStruct((coutp, hwp), jnp.float32),
        grid_spec=pltpu.PrefetchScalarGridSpec(
            num_scalar_prefetch=0,
            grid=grid,
            in_specs=[
                pl.BlockSpec((c1, hwp), lambda i: (0, 0)),          # x1
                pl.BlockSpec((c2, hwp), lambda i: (0, 0)),          # x2
                pl.BlockSpec((c1, hwp), lambda i: (0, 0)),          # mask1
                pl.BlockSpec((c2, hwp), lambda i: (0, 0)),          # mask2
                pl.BlockSpec((cout_block, c1), lambda i: (i, 0)),   # W half 1
                pl.BlockSpec((cout_block, c2), lambda i: (i, 0)),   # W half 2
                pl.BlockSpec((cout_block, 1), lambda i: (i, 0)),    # bias column
            ],
            out_specs=pl.BlockSpec((cout_block, hwp), lambda i: (i, 0)),
        ),
        compiler_params=pltpu.CompilerParams(
            dimension_semantics=("parallel",),
        ),
    )(x1p, x2p, m1, m2, w1, w2, bcol)

    # (Coutp, HWp) -> slice padding -> (1, Cout, H, W); no transpose needed.
    return out[:cout, :hw].reshape(1, cout, h, wd)


if __name__ == "__main__":
    key = jax.random.PRNGKey(0)
    k1, k2, kw, kb, kd = jax.random.split(key, 5)

    # Shapes implied by the module: two (1, 256, 13, 13) inputs,
    # Conv2d(512, 1000, kernel_size=1) weights.
    x58 = jax.random.normal(k1, (1, 256, 13, 13), dtype=jnp.float32)
    x60 = jax.random.normal(k2, (1, 256, 13, 13), dtype=jnp.float32)
    w = jax.random.normal(kw, (1000, 512, 1, 1), dtype=jnp.float32) * 0.02
    b = jax.random.normal(kb, (1000,), dtype=jnp.float32) * 0.01

    y = cat_dropout_conv2d(x58, x60, w, b, kd)
    y = jax.block_until_ready(y)
    assert y.shape == (1, 1000, 13, 13), y.shape
    print("KERNEL_OK")
</pallas_src>

<mosaic_0001>
module attributes {stable_mosaic.version = 11 : i64} {
  func.func @cat_dropout_conv1x1_kernel(%arg0: i32, %arg1: memref<256x256xbf16, #tpu.memory_space<vmem>>, %arg2: memref<256x256xbf16, #tpu.memory_space<vmem>>, %arg3: memref<256x256xbf16, #tpu.memory_space<vmem>>, %arg4: memref<256x256xbf16, #tpu.memory_space<vmem>>, %arg5: memref<512x256xbf16, #tpu.memory_space<vmem>>, %arg6: memref<512x256xbf16, #tpu.memory_space<vmem>>, %arg7: memref<512x1xf32, #tpu.memory_space<vmem>>, %arg8: memref<512x256xf32, #tpu.memory_space<vmem>>) attributes {dimension_semantics = [#tpu.dimension_semantics<parallel>], iteration_bounds = array<i64: 2>, scalar_prefetch = 0 : i64, scratch_operands = 0 : i64, tpu.core_type = #tpu.core_type<tc>, window_params = [{pipeline_mode = #tpu.pipeline_mode<synchronous>, transform_indices = @transform_0, window_bounds = array<i64: 256, 256>}, {pipeline_mode = #tpu.pipeline_mode<synchronous>, transform_indices = @transform_1, window_bounds = array<i64: 256, 256>}, {pipeline_mode = #tpu.pipeline_mode<synchronous>, transform_indices = @transform_2, window_bounds = array<i64: 256, 256>}, {pipeline_mode = #tpu.pipeline_mode<synchronous>, transform_indices = @transform_3, window_bounds = array<i64: 256, 256>}, {transform_indices = @transform_4, window_bounds = array<i64: 512, 256>}, {transform_indices = @transform_5, window_bounds = array<i64: 512, 256>}, {transform_indices = @transform_6, window_bounds = array<i64: 512, 1>}, {transform_indices = @transform_7, window_bounds = array<i64: 512, 256>}]} {
    %c0 = arith.constant 0 : index
    %c0_0 = arith.constant 0 : index
    %0 = vector.load %arg1[%c0, %c0_0] : memref<256x256xbf16, #tpu.memory_space<vmem>>, vector<256x256xbf16>
    %c0_1 = arith.constant 0 : index
    %c0_2 = arith.constant 0 : index
    %1 = vector.load %arg3[%c0_1, %c0_2] : memref<256x256xbf16, #tpu.memory_space<vmem>>, vector<256x256xbf16>
    %2 = arith.mulf %0, %1 : vector<256x256xbf16>
    %c0_3 = arith.constant 0 : index
    %c0_4 = arith.constant 0 : index
    %3 = vector.load %arg2[%c0_3, %c0_4] : memref<256x256xbf16, #tpu.memory_space<vmem>>, vector<256x256xbf16>
    %c0_5 = arith.constant 0 : index
    %c0_6 = arith.constant 0 : index
    %4 = vector.load %arg4[%c0_5, %c0_6] : memref<256x256xbf16, #tpu.memory_space<vmem>>, vector<256x256xbf16>
    %5 = arith.mulf %3, %4 : vector<256x256xbf16>
    %c0_7 = arith.constant 0 : index
    %c0_8 = arith.constant 0 : index
    %6 = vector.load %arg5[%c0_7, %c0_8] : memref<512x256xbf16, #tpu.memory_space<vmem>>, vector<512x256xbf16>
    %cst = arith.constant dense<0.000000e+00> : vector<512x256xf32>
    %7 = tpu.matmul %6, %2, %cst {dimension_numbers = #tpu.dot_dimension_numbers<[1], [0], [0], [1], [0, 0, 1, 1], [], []>} : vector<512x256xbf16>, vector<256x256xbf16>, vector<512x256xf32> -> vector<512x256xf32>
    %c0_9 = arith.constant 0 : index
    %c0_10 = arith.constant 0 : index
    %8 = vector.load %arg6[%c0_9, %c0_10] : memref<512x256xbf16, #tpu.memory_space<vmem>>, vector<512x256xbf16>
    %cst_11 = arith.constant dense<0.000000e+00> : vector<512x256xf32>
    %9 = tpu.matmul %8, %5, %cst_11 {dimension_numbers = #tpu.dot_dimension_numbers<[1], [0], [0], [1], [0, 0, 1, 1], [], []>} : vector<512x256xbf16>, vector<256x256xbf16>, vector<512x256xf32> -> vector<512x256xf32>
    %10 = arith.addf %7, %9 : vector<512x256xf32>
    %c0_12 = arith.constant 0 : index
    %c0_13 = arith.constant 0 : index
    %11 = vector.load %arg7[%c0_12, %c0_13] : memref<512x1xf32, #tpu.memory_space<vmem>>, vector<512x1xf32>
    %12 = vector.broadcast %11 : vector<512x1xf32> to vector<512x256xf32>
    %13 = arith.addf %10, %12 : vector<512x256xf32>
    %c0_14 = arith.constant 0 : index
    %c0_15 = arith.constant 0 : index
    %14 = vector.load %arg8[%c0_14, %c0_15] : memref<512x256xf32, #tpu.memory_space<vmem>>, vector<512x256xf32>
    tpu.vector_store %arg8[%c0_14, %c0_15], %13 {strides = array<i32>} : memref<512x256xf32, #tpu.memory_space<vmem>>, vector<512x256xf32>,
    return
  }
  func.func @transform_0(%arg0: i32) -> (i32, i32) {
    %c0_i32 = arith.constant 0 : i32
    %c0_i32_0 = arith.constant 0 : i32
    %c0_i32_1 = arith.constant 0 : i32
    return %c0_i32, %c0_i32_0 : i32, i32
  }
  func.func @transform_1(%arg0: i32) -> (i32, i32) {
    %c0_i32 = arith.constant 0 : i32
    %c0_i32_0 = arith.constant 0 : i32
    %c0_i32_1 = arith.constant 0 : i32
    return %c0_i32, %c0_i32_0 : i32, i32
  }
  func.func @transform_2(%arg0: i32) -> (i32, i32) {
    %c0_i32 = arith.constant 0 : i32
    %c0_i32_0 = arith.constant 0 : i32
    %c0_i32_1 = arith.constant 0 : i32
    return %c0_i32, %c0_i32_0 : i32, i32
  }
  func.func @transform_3(%arg0: i32) -> (i32, i32) {
    %c0_i32 = arith.constant 0 : i32
    %c0_i32_0 = arith.constant 0 : i32
    %c0_i32_1 = arith.constant 0 : i32
    return %c0_i32, %c0_i32_0 : i32, i32
  }
  func.func @transform_4(%arg0: i32) -> (i32, i32) {
    %c0_i32 = arith.constant 0 : i32
    %c0_i32_0 = arith.constant 0 : i32
    return %arg0, %c0_i32 : i32, i32
  }
  func.func @transform_5(%arg0: i32) -> (i32, i32) {
    %c0_i32 = arith.constant 0 : i32
    %c0_i32_0 = arith.constant 0 : i32
    return %arg0, %c0_i32 : i32, i32
  }
  func.func @transform_6(%arg0: i32) -> (i32, i32) {
    %c0_i32 = arith.constant 0 : i32
    %c0_i32_0 = arith.constant 0 : i32
    return %arg0, %c0_i32 : i32, i32
  }
  func.func @transform_7(%arg0: i32) -> (i32, i32) {
    %c0_i32 = arith.constant 0 : i32
    %c0_i32_0 = arith.constant 0 : i32
    return %arg0, %c0_i32 : i32, i32
  }
}

</mosaic_0001>

<bundles_post_ra>
// kernel: tpu_custom_call.1
= control target key start
LH: loop header
LB: loop body
LE: loop exit
PB: predicated region body
PF: predicated region fallthrough
CT: control target
= control target key end

     0   :  { %s4534_s0 = inlined_call_operand.hbm [shape: bf16[256,256], index: 0, kind: input, shape index: {}]   ;;  %s4535_s1 = inlined_call_operand.hbm [shape: bf16[256,256], index: 1, kind: input, shape index: {}]   ;;  %s4536_s2 = inlined_call_operand.hbm [shape: bf16[256,256], index: 2, kind: input, shape index: {}]   ;;  %s4537_s3 = inlined_call_operand.hbm [shape: bf16[256,256], index: 3, kind: input, shape index: {}]   ;;  %s4538_s4 = inlined_call_operand.vmem [shape: bf16[1024,256], index: 4, kind: input, shape index: {}]   ;;  %s4539_s5 = inlined_call_operand.hbm [shape: bf16[1024,256], index: 5, kind: input, shape index: {}]   ;;  %s4540_s6 = inlined_call_operand.vmem [shape: f32[1024,1], index: 6, kind: input, shape index: {}]   ;;  %s4541_s7 = inlined_call_operand.hbm [shape: f32[1024,256], index: 7, kind: output, shape index: {}]  }
   0x1   :  { %4548 = sst [smem:[#allocation17_spill]] %s4534_s0 }
   0x2   :  { %12 = vsyncpa [#allocation3], 0 }
   0x3   :  { %13 = vsyncpa [#allocation6], 0 }
   0x4   :  { %14 = vsyncpa [#allocation9], 0 }
   0x5   :  { %15 = vsyncpa [#allocation4], 0 }
   0x6   :  { %17 = vsyncpa [#allocation4 + $0x1], 0  ;;  %s3952_s24 = smov 0   ;;  %s3954_s25 = smov 0  }
   0x7   :  { %s3956_s26 = smov 0   ;;  %s3958_s27 = smov 0  }
   0x8 LB: > { %s3973_s28 = sadd.s32 4294967295, %s3899_s27   ;;  %s3179_s29 = sadd.s32 4294967294, %s3899_s27   ;;  %s3899_s27 = sphi %s3958_s27, %s4573_s27   ;;  %s3895_s26 = sphi %s3956_s26, %s4572_s26   ;;  %s3891_s25 = sphi %s3954_s25, %s4571_s25   ;;  %s3887_s24 = sphi %s3952_s24, %s4570_s24  }
   0x9   : > { %p153_p0 = scmp.ne.s32.totalorder %s3891_s25, %s3887_s24  ;;  %p4542_p1 = scmp.eq.s32.totalorder %s3973_s28, 0 }
   0xa   : > { %p203_p2 = scmp.eq.s32.totalorder %s3973_s28, 1  ;;  %p209_p3 = scmp.eq.s32.totalorder %s3179_s29, 1 }
   0xb   : > { %p3982_p4 = por %p4542_p1, %p153_p0  ;;  %p3180_p5 = scmp.ge.s32.totalorder %s3899_s27, 1 }
   0xc   : > { %p3987_p6 = por %p209_p3, %p153_p0  ;;  %p216_p7 = scmp.lt.s32.totalorder %s3899_s27, 3 }
   0xd   : > { %s4549_s30 = scalar_select %p3982_p4, 1, 0 }
   0xe   : > { %s4550_s8 = scalar_select %p3987_p6, 1, 0 }
   0xf   : > { %p3992_p8 = pnand %p3180_p5, %p216_p7  ;;  %s3901_s10 = smov [#allocation2]  }
  0x10   : > { %s228_s11 = sshll.u32 %s3901_s10, 4  ;;  %s3902_s13 = smov [#allocation5]   ;;  %s229_s11 = int_to_ptr.vmem [resolvable:$true] %s228_s11 }
  0x11   : > { %s4551_s9 = scalar_select %p3992_p8, 1, 0 }
  0x12   : > { %p3425_p9 = pneg %p3992_p8  ;;  %s241_s14 = sshll.u32 %s3902_s13, 4  ;;  %s242_s14 = int_to_ptr.vmem [resolvable:$true] %s241_s14 }
  0x13   : > { %s3903_s15 = smov [#allocation7]   ;;  %s3702_s17 = scalar_lea.vmem %s229_s11, 4096 }
  0x14   : > { %p4001_p11 = pnand %p3425_p9, %p4542_p1  ;;  %s254_s16 = sshll.u32 %s3903_s15, 4  ;;  %s255_s16 = int_to_ptr.vmem [resolvable:$true] %s254_s16 }
  0x15   : > { %p3703_p13 = scmp.ne.s32.totalorder %s229_s11, %s3702_s17  ;;  %p3710_p5 = scmp.lt.s32.totalorder %s229_s11, %s229_s11 }
  0x16   : > { %p3693_p12 = pneg %p4001_p11  ;;  %p3711_p7 = scmp.lt.s32.totalorder %s3702_s17, %s3702_s17 }
  0x18   : > { %p3705_p0 = pnand %p3703_p13, %p3693_p12  ;;  %p3712_p9 = por %p3711_p7, %p3710_p5 }
  0x1a   : > { %p3706_p3 = pneg %p3705_p0 }
  0x1c   : > { %p3713_p10 = pnand %p3712_p9, %p3706_p3 }
  0x1e   : > { %3716 = shalt.err (!%p3713_p10)
}
  0x1f   : > { %s4543_s18 = smov 128   ;;  %s4544_s19 = smov 8  }
  0x20   : > { %s4553_s0 = sld [smem:[#allocation17_spill]]  ;;  %s3728_s22 = scalar_lea.vmem %s242_s14, 4096 }
  0x21   : > { %p3729_p13 = scmp.ne.s32.totalorder %s242_s14, %s3728_s22  ;;  %p3736_p3 = scmp.lt.s32.totalorder %s242_s14, %s242_s14 }
  0x22   : > { %p3737_p10 = scmp.lt.s32.totalorder %s3728_s22, %s3728_s22 }
  0x23   : > { %p3731_p0 = pnand %p3729_p13, %p3693_p12 }
  0x24   : > { %p3738_p7 = por %p3737_p10, %p3736_p3 }
  0x25   : > { %p3732_p5 = pneg %p3731_p0 }
  0x26   : > { %3428 = dma.hbm_to_vmem [thread:$0]  (!%p4001_p11), %s4553_s0, 4096, %s229_s11, [#allocation3], %s4543_s18, %s4543_s18, %s4544_s19  }
  0x27   : > { %p3739_p9 = pnand %p3738_p7, %p3732_p5 }
  0x29   : > { %3742 = shalt.err (!%p3739_p9)
}
  0x2a   : > { %3431 = dma.hbm_to_vmem [thread:$0]  (!%p4001_p11), %s4535_s1, 4096, %s242_s14, [#allocation6], %s4543_s18, %s4543_s18, %s4544_s19  }
  0x2b   : > { %s3754_s10 = scalar_lea.vmem %s255_s16, 4096  ;;  %p3762_p3 = scmp.lt.s32.totalorder %s255_s16, %s255_s16 }
  0x2c   : > { %p3755_p1 = scmp.ne.s32.totalorder %s255_s16, %s3754_s10  ;;  %p3763_p5 = scmp.lt.s32.totalorder %s3754_s10, %s3754_s10 }
  0x2e   : > { %p3757_p13 = pnand %p3755_p1, %p3693_p12  ;;  %p3764_p10 = por %p3763_p5, %p3762_p3 }
  0x30   : > { %p3758_p0 = pneg %p3757_p13 }
  0x32   : > { %p3765_p7 = pnand %p3764_p10, %p3758_p0 }
  0x34   : > { %3768 = shalt.err (!%p3765_p7)
}
  0x35   : > { %3434 = dma.hbm_to_vmem [thread:$0]  (!%p4001_p11), %s4536_s2, 4096, %s255_s16, [#allocation6], %s4543_s18, %s4543_s18, %s4544_s19  }
  0x36   : > { %s3906_s14 = smov [#allocation8]  }
  0x37   : > { %s267_s15 = sshll.u32 %s3906_s14, 4  ;;  %s268_s15 = int_to_ptr.vmem [resolvable:$true] %s267_s15 }
  0x38   : > { %s3780_s17 = scalar_lea.vmem %s268_s15, 4096  ;;  %p3788_p0 = scmp.lt.s32.totalorder %s268_s15, %s268_s15 }
  0x39   : > { %p3781_p1 = scmp.ne.s32.totalorder %s268_s15, %s3780_s17  ;;  %p3789_p3 = scmp.lt.s32.totalorder %s3780_s17, %s3780_s17 }
  0x3b   : > { %p3783_p9 = pnand %p3781_p1, %p3693_p12  ;;  %p3790_p5 = por %p3789_p3, %p3788_p0 }
  0x3d   : > { %p3784_p13 = pneg %p3783_p9 }
  0x3f   : > { %p3791_p10 = pnand %p3790_p5, %p3784_p13 }
  0x41   : > { %3794 = shalt.err (!%p3791_p10)
}
  0x42   : > { %3437 = dma.hbm_to_vmem [thread:$0]  (!%p4001_p11), %s4537_s3, 4096, %s268_s15, [#allocation9], %s4543_s18, %s4543_s18, %s4544_s19  }
  0x43   : > { %s4052_s12 = sadd.s32 1, %s3899_s27   ;;  %s140_s21 = sadd.s32 1, %s3895_s26 }
  0x44   : > { %s137_s22 = ssub.s32 %s3899_s27, %s4052_s12  ;;  %p147_p12 = scmp.ne.s32.totalorder %s3895_s26, %s3891_s25 }
  0x45   : > { %p138_p7 = scmp.eq.s32.totalorder %s137_s22, 0  ;;  %p148_p1 = scmp.eq.s32.totalorder %s3899_s27, 0 }
  0x46   : > { %p4062_p9 = por %p203_p2, %p147_p12  ;;  %p3450_p13 = scmp.lt.s32.totalorder %s3899_s27, 2 }
  0x47   : > { %s4068_s29 = scalar_select %p138_p7, %s3895_s26, %s140_s21  }
  0x48   : > { %s4554_s23 = scalar_select %p4062_p9, 1, 0 }
  0x49   : > { %p149_p0 = por %p148_p1, %p147_p12  ;;  %s291_s10 = sand.u32 1, %s3899_s27  }
  0x4a   : > { %s293_s11 = sand.u32 1, %s3895_s26   ;;  %s3401_s14 = sshll.u32 %s3899_s27, 13 }
  0x4b   : > { %s3186_s13 = sshll.u32 %s293_s11, 9  ;;  %s4076_s16 = scalar_lea.hbm %s4539_s5, %s3401_s14 }
  0x4c   : > { %s295_s20 = scalar_lea.vmem [#allocation10], %s3186_s13  ;;  %p4078_p2 = pnand %p3450_p13, %p149_p0 }
  0x4d   : > { %s303_s22 = sshll.u32 %s295_s20, 4  ;;  %s4084_s21 = scalar_lea.sflag [#allocation3], %s291_s10  ;;  %s4082_s22 = int_to_ptr.vmem [resolvable:$true] %s303_s22 }
  0x4e   : > { %s3795_s11 = scalar_lea.hbm %s4076_s16, 8192  ;;  %p3797_p3 = pneg %p4078_p2 }
  0x4f   : > { %p3796_p11 = scmp.ne.s32.totalorder %s4076_s16, %s3795_s11  ;;  %s3800_s13 = scalar_lea.hbm %s4539_s5, 16384 }
  0x50   : > { %p3801_p12 = scmp.lt.s32.totalorder %s4076_s16, %s4539_s5  ;;  %p3802_p7 = scmp.lt.s32.totalorder %s3800_s13, %s3795_s11 }
  0x51   : > { %p3798_p5 = pnand %p3797_p3, %p3796_p11 }
  0x52   : > { %p3803_p1 = por %p3802_p7, %p3801_p12 }
  0x53   : > { %p3799_p10 = pneg %p3798_p5 }
  0x55   : > { %p3804_p13 = pnand %p3803_p1, %p3799_p10 }
  0x57   : > { %3807 = shalt.err (!%p3804_p13)
}
  0x58   : > { %s3808_s10 = scalar_lea.vmem %s4082_s22, 8192  ;;  %s3907_s19 = smov [#allocation10]  }
  0x59   : > { %p3809_p0 = scmp.ne.s32.totalorder %s4082_s22, %s3808_s10  ;;  %s3813_s0 = sshll.u32 %s3907_s19, 4  ;;  %s3814_s0 = int_to_ptr.vmem [resolvable:$false] %s3813_s0 }
  0x5a   : > { %s3815_s14 = scalar_lea.vmem %s3814_s0, 16384  ;;  %p3816_p5 = scmp.lt.s32.totalorder %s4082_s22, %s3814_s0 }
  0x5b   : > { %p3811_p6 = pnand %p3809_p0, %p3797_p3  ;;  %p3817_p9 = scmp.lt.s32.totalorder %s3815_s14, %s3808_s10 }
  0x5d   : > { %p3812_p11 = pneg %p3811_p6  ;;  %p3818_p4 = por %p3817_p9, %p3816_p5 }
  0x5f   : > { %p3819_p8 = pnand %p3818_p4, %p3812_p11 }
  0x61   : > { %3822 = shalt.err (!%p3819_p8)
}
  0x62   : > { %s4556_s11 = smov 8   ;;  %s4557_s15 = smov 128  }
  0x63   : > { %3441 = dma.hbm_to_vmem [thread:$0]  (!%p4078_p2), %s4076_s16, 8192, %s4082_s22, %s4084_s21, %s4557_s15, %s4557_s15, %s4556_s11  }
  0x64   : > { %p4558_p6 = scmp.ne.s32.totalorder %s4551_s9, 0 }
  0x65   : > { %p4559_p3 = scmp.eq.s32.totalorder (!%p4558_p6), %s3973_s28, 0 }
  0x66   : > { %324 = sbr.rel (%p4558_p6) target bundleno = 656 (0x290), region = 48 }
  0x6b   : > { %3866 = dma.done.wait (%p4559_p3), [#allocation3], 4096   ;;  %p4560_p10 = pmov %p4559_p3 }
  0x6c   : > { %p4561_p4 = pmov %p4559_p3 }
  0x6d   : > { %3868 = vsyncadd (%p4560_p10), [#allocation3], 4294963200 }
  0x6e   : > { %3870 = dma.done.wait (%p4561_p4), [#allocation6], 8192   ;;  %p4562_p8 = pmov %p4559_p3 }
  0x6f   : > { %p4563_p9 = pmov %p4559_p3 }
  0x70   : > { %3872 = vsyncadd (%p4562_p8), [#allocation6], 4294959104 }
  0x71   : > { %3874 = dma.done.wait (%p4563_p9), [#allocation9], 4096   ;;  %p4564_p2 = pmov %p4559_p3 }
  0x72   : > { %s342_s0 = sand.u32 1, %s3973_s28   ;;  %s4124_s9 = sand.u32 1, %s3891_s25  }
  0x73   : > { %3876 = vsyncadd (%p4564_p2), [#allocation9], 4294963200  ;;  %s3195_s18 = sshll.u32 %s4124_s9, 9  ;;  %s343_s19 = scalar_lea.sflag [#allocation3], %s342_s0 }
  0x74   : > { %s4127_s16 = scalar_lea.vmem [#allocation10], %s3195_s18  ;;  %p4565_p12 = scmp.ne.s32.totalorder %s4549_s30, 0 }
  0x76   : > { %3878 = dma.done.wait (%p4565_p12), %s343_s19, 8192  }
  0x77   : > { %3880 = vsyncadd (%p4565_p12), %s343_s19, 4294959104  ;;  %v513_v0 = vld [vmem:[#allocation5 + $0x70] sm:$0xff]  ;;  %v514_v1 = vld [vmem:[#allocation5 + $0x78] sm:$0xff]  ;;  %v3908_v52 = vmov 0   ;;  %s3197_s30 = sshll.u32 %s3973_s28, 6  ;;  %s3196_s15 = sshll.u32 %s4124_s9, 10 }
  0x78   : > { %v545_v2 = vld [vmem:[#allocation8 + $0x70] sm:$0xff]  ;;  %v546_v3 = vld [vmem:[#allocation8 + $0x78] sm:$0xff]  ;;  %v511_v10 = vld [vmem:[#allocation5 + $0x60] sm:$0xff]  ;;  %3497 = vset.pattern.permute.xlu0 %v3908_v52  ;;  %3498 = vset.pattern.permute.xlu1 %v3908_v52  ;;  %p4136_p7 = scmp.lt.s32.totalorder %s3197_s30, 127  ;;  %s4331_s0 = scalar_lea.vmem [#allocation11], %s3196_s15 }
  0x79   : > { %v577_v4 = vmul.bf16 %v545_v2, %v513_v0  ;;  %v417_v5 = vld [vmem:[#allocation2 + $0x70] sm:$0xff]  ;;  %v418_v6 = vld [vmem:[#allocation2 + $0x78] sm:$0xff]  ;;  %v578_v7 = vmul.bf16 %v546_v3, %v514_v1  ;;  %v512_v13 = vld [vmem:[#allocation5 + $0x68] sm:$0xff]  ;;  %s3404_s18 = sshll.u32 %s3973_s28, 14  ;;  %s3044_s19 = sshll.u32 %s4331_s0, 4  ;;  %s4489_s19 = int_to_ptr.vmem [resolvable:$true] %s3044_s19 }
  0x7a   : > { %v449_v8 = vld [vmem:[#allocation7 + $0x70] sm:$0xff]  ;;  %v450_v9 = vld [vmem:[#allocation7 + $0x78] sm:$0xff]  ;;  %v543_v14 = vld [vmem:[#allocation8 + $0x60] sm:$0xff]  ;;  %s4575_s30 = smov (!%p4136_p7, %s3197_s30), 127  ;;  %s4487_s22 = scalar_lea.hbm %s4541_s7, %s3404_s18 }
  0x7b   : > { %v481_v11 = vmul.bf16 %v449_v8, %v417_v5  ;;  %v482_v12 = vmul.bf16 %v450_v9, %v418_v6  ;;  %v544_v15 = vld [vmem:[#allocation8 + $0x68] sm:$0xff]  ;;  %v3281_v16 = vcombine.high %v577_v4, %v578_v7  ;;  %v3280_v17 = vcombine.low %v577_v4, %v578_v7  ;;  %v415_v20 = vld [vmem:[#allocation2 + $0x60] sm:$0xff]  ;;  %v509_v27 = vld [vmem:[#allocation5 + $0x50] sm:$0xff]  ;;  %s3402_s21 = sshll.u32 %s4575_s30, 3  ;;  %s3030_s28 = scalar_lea.sflag [#allocation4], %s4124_s9 }
  0x7c   : > { %v575_v18 = vmul.bf16 %v543_v14, %v511_v10  ;;  %v576_v19 = vmul.bf16 %v544_v15, %v512_v13  ;;  %v416_v21 = vld [vmem:[#allocation2 + $0x68] sm:$0xff]  ;;  %v447_v22 = vld [vmem:[#allocation7 + $0x60] sm:$0xff]  ;;  %v510_v28 = vld [vmem:[#allocation5 + $0x58] sm:$0xff]  ;;  %s4152_s20 = scalar_lea.vmem %s4538_s4, %s3402_s21  ;;  %s4161_s11 = scalar_lea.vmem %s4540_s6, %s3402_s21 }
  0x7d   : > { %v3377_v23 = vcombine.high %v481_v11, %v482_v12  ;;  %v3376_v24 = vcombine.low %v481_v11, %v482_v12  ;;  %v448_v25 = vld [vmem:[#allocation7 + $0x68] sm:$0xff]  ;;  %v479_v26 = vmul.bf16 %v447_v22, %v415_v20  ;;  %1203 = vmatprep.subr.bf16.mxu0 %v3281_v16  ;;  %v541_v31 = vld [vmem:[#allocation8 + $0x50] sm:$0xff]  ;;  %v542_v32 = vld [vmem:[#allocation8 + $0x58] sm:$0xff]  ;;  %s3823_s21 = scalar_lea.vmem %s4489_s19, 16384  ;;  %p4567_p13 = scmp.ne.s32.totalorder %s4554_s23, 0 }
  0x7e   : > { %v3279_v29 = vcombine.high %v575_v18, %v576_v19  ;;  %v480_v30 = vmul.bf16 %v448_v25, %v416_v21  ;;  %v413_v33 = vld [vmem:[#allocation2 + $0x50] sm:$0xff]  ;;  %1204 = vmatpush1.bf16.msra.mxu0 %v3280_v17  ;;  %v3278_v34 = vcombine.low %v575_v18, %v576_v19  ;;  %v573_v35 = vmul.bf16 %v541_v31, %v509_v27  ;;  %v414_v37 = vld [vmem:[#allocation2 + $0x58] sm:$0xff]  ;;  %v507_v43 = vld [vmem:[#allocation5 + $0x40] sm:$0xff]  ;;  %p3824_p1 = scmp.ne.s32.totalorder %s4489_s19, %s3823_s21  ;;  %s3909_s13 = smov [#allocation11]  }
  0x7f   : > { %2036 = vmatprep.subr.bf16.mxu1 %v3377_v23  ;;  %v574_v36 = vmul.bf16 %v542_v32, %v510_v28  ;;  %v445_v38 = vld [vmem:[#allocation7 + $0x50] sm:$0xff]  ;;  %v446_v39 = vld [vmem:[#allocation7 + $0x58] sm:$0xff]  ;;  %v508_v44 = vld [vmem:[#allocation5 + $0x48] sm:$0xff]  ;;  %s3827_s17 = sshll.u32 %s3909_s13, 4  ;;  %s3828_s17 = int_to_ptr.vmem [resolvable:$false] %s3827_s17 }
  0x80   : > { %2037 = vmatpush1.bf16.msra.mxu1 %v3376_v24  ;;  %1205 = vmatprep.subr.bf16.mxu0 %v3279_v29  ;;  %v3375_v40 = vcombine.high %v479_v26, %v480_v30  ;;  %v3374_v41 = vcombine.low %v479_v26, %v480_v30  ;;  %v477_v42 = vmul.bf16 %v445_v38, %v413_v33  ;;  %v539_v45 = vld [vmem:[#allocation8 + $0x40] sm:$0xff]  ;;  %v540_v48 = vld [vmem:[#allocation8 + $0x48] sm:$0xff]  ;;  %v505_v56 = vld [vmem:[#allocation5 + $0x30] sm:$0xff]  ;;  %p3825_p0 = pnand %p3824_p1, %p4567_p13  ;;  %p3830_p5 = scmp.lt.s32.totalorder %s4489_s19, %s3828_s17 }
  0x81   : > { %v3277_v46 = vcombine.high %v573_v35, %v574_v36  ;;  %v478_v47 = vmul.bf16 %v446_v39, %v414_v37  ;;  %v571_v49 = vmul.bf16 %v539_v45, %v507_v43  ;;  %v411_v50 = vld [vmem:[#allocation2 + $0x40] sm:$0xff]  ;;  %v412_v51 = vld [vmem:[#allocation2 + $0x48] sm:$0xff]  ;;  %v572_v53 = vmul.bf16 %v540_v48, %v508_v44  ;;  %v506_v61 = vld [vmem:[#allocation5 + $0x38] sm:$0xff] }
  0x82   : > { %2038 = vmatprep.subr.bf16.mxu1 %v3375_v40  ;;  %v443_v54 = vld [vmem:[#allocation7 + $0x40] sm:$0xff]  ;;  %v444_v55 = vld [vmem:[#allocation7 + $0x48] sm:$0xff]  ;;  %1206 = vmatpush1.bf16.msra.mxu0 %v3278_v34  ;;  %v3276_v58 = vcombine.low %v573_v35, %v574_v36  ;;  %v537_v62 = vld [vmem:[#allocation8 + $0x30] sm:$0xff]  ;;  %p3826_p11 = pneg %p3825_p0 }
  0x83   : > { %v3373_v57 = vcombine.high %v477_v42, %v478_v47  ;;  %v475_v59 = vmul.bf16 %v443_v54, %v411_v50  ;;  %v476_v60 = vmul.bf16 %v444_v55, %v412_v51  ;;  %v538_v63 = vld [vmem:[#allocation8 + $0x38] sm:$0xff]  ;;  %1207 = vmatprep.subr.bf16.mxu0 %v3277_v46  ;;  %v3372_v0 = vcombine.low %v477_v42, %v478_v47  ;;  %v409_v3 = vld [vmem:[#allocation2 + $0x30] sm:$0xff]  ;;  %v503_v10 = vld [vmem:[#allocation5 + $0x20] sm:$0xff] }
  0x84   : > { %2039 = vmatpush1.bf16.msra.mxu1 %v3374_v41  ;;  %v3275_v1 = vcombine.high %v571_v49, %v572_v53  ;;  %v569_v2 = vmul.bf16 %v537_v62, %v505_v56  ;;  %v410_v4 = vld [vmem:[#allocation2 + $0x38] sm:$0xff]  ;;  %v441_v5 = vld [vmem:[#allocation7 + $0x30] sm:$0xff]  ;;  %v570_v7 = vmul.bf16 %v538_v63, %v506_v61  ;;  %v504_v11 = vld [vmem:[#allocation5 + $0x28] sm:$0xff]  ;;  %v3274_v16 = vcombine.low %v571_v49, %v572_v53 }
  0x85   : > { %2040 = vmatprep.subr.bf16.mxu1 %v3373_v57  ;;  %v3371_v6 = vcombine.high %v475_v59, %v476_v60  ;;  %v442_v8 = vld [vmem:[#allocation7 + $0x38] sm:$0xff]  ;;  %v473_v9 = vmul.bf16 %v441_v5, %v409_v3  ;;  %v535_v13 = vld [vmem:[#allocation8 + $0x20] sm:$0xff]  ;;  %v536_v14 = vld [vmem:[#allocation8 + $0x28] sm:$0xff]  ;;  %v3370_v17 = vcombine.low %v475_v59, %v476_v60 }
  0x86   : > { %v474_v12 = vmul.bf16 %v442_v8, %v410_v4  ;;  %v407_v15 = vld [vmem:[#allocation2 + $0x20] sm:$0xff]  ;;  %1208 = vmatpush1.bf16.msra.mxu0 %v3276_v58  ;;  %v408_v18 = vld [vmem:[#allocation2 + $0x28] sm:$0xff]  ;;  %v3273_v21 = vcombine.high %v569_v2, %v570_v7  ;;  %v567_v22 = vmul.bf16 %v535_v13, %v503_v10  ;;  %v568_v23 = vmul.bf16 %v536_v14, %v504_v11  ;;  %v501_v24 = vld [vmem:[#allocation5 + $0x10] sm:$0xff] }
  0x87   : > { %v439_v19 = vld [vmem:[#allocation7 + $0x20] sm:$0xff]  ;;  %v440_v20 = vld [vmem:[#allocation7 + $0x28] sm:$0xff]  ;;  %1209 = vmatprep.subr.bf16.mxu0 %v3275_v1  ;;  %v502_v25 = vld [vmem:[#allocation5 + $0x18] sm:$0xff]  ;;  %v3272_v35 = vcombine.low %v569_v2, %v570_v7 }
  0x88   : > { %2041 = vmatpush1.bf16.msra.mxu1 %v3372_v0  ;;  %v3369_v26 = vcombine.high %v473_v9, %v474_v12  ;;  %v471_v27 = vmul.bf16 %v439_v19, %v407_v15  ;;  %v472_v28 = vmul.bf16 %v440_v20, %v408_v18  ;;  %v533_v29 = vld [vmem:[#allocation8 + $0x10] sm:$0xff]  ;;  %v534_v30 = vld [vmem:[#allocation8 + $0x18] sm:$0xff]  ;;  %v3368_v36 = vcombine.low %v473_v9, %v474_v12  ;;  %v499_v40 = vld [vmem:[#allocation5] sm:$0xff] }
  0x89   : > { %2042 = vmatprep.subr.bf16.mxu1 %v3371_v6  ;;  %v405_v31 = vld [vmem:[#allocation2 + $0x10] sm:$0xff]  ;;  %v406_v32 = vld [vmem:[#allocation2 + $0x18] sm:$0xff]  ;;  %v3271_v37 = vcombine.high %v567_v22, %v568_v23  ;;  %v565_v38 = vmul.bf16 %v533_v29, %v501_v24  ;;  %v566_v39 = vmul.bf16 %v534_v30, %v502_v25  ;;  %v500_v41 = vld [vmem:[#allocation5 + $0x8] sm:$0xff]  ;;  %v3270_v51 = vcombine.low %v567_v22, %v568_v23 }
  0x8a   : > { %v437_v33 = vld [vmem:[#allocation7 + $0x10] sm:$0xff]  ;;  %v438_v34 = vld [vmem:[#allocation7 + $0x18] sm:$0xff]  ;;  %1210 = vmatpush1.bf16.msra.mxu0 %v3274_v16  ;;  %v3367_v42 = vcombine.high %v471_v27, %v472_v28  ;;  %v531_v45 = vld [vmem:[#allocation8] sm:$0xff]  ;;  %v3366_v52 = vcombine.low %v471_v27, %v472_v28 }
  0x8b   : > { %1211 = vmatprep.subr.bf16.mxu0 %v3273_v21  ;;  %v469_v43 = vmul.bf16 %v437_v33, %v405_v31  ;;  %v470_v44 = vmul.bf16 %v438_v34, %v406_v32  ;;  %v532_v46 = vld [vmem:[#allocation8 + $0x8] sm:$0xff]  ;;  %v403_v47 = vld [vmem:[#allocation2] sm:$0xff]  ;;  %v3269_v53 = vcombine.high %v565_v38, %v566_v39  ;;  %v563_v54 = vmul.bf16 %v531_v45, %v499_v40  ;;  %v529_v56 = vld [vmem:[#allocation5 + $0xf0] sm:$0xff] }
  0x8c   : > { %2043 = vmatpush1.bf16.msra.mxu1 %v3370_v17  ;;  %v404_v48 = vld [vmem:[#allocation2 + $0x8] sm:$0xff]  ;;  %v435_v49 = vld [vmem:[#allocation7] sm:$0xff]  ;;  %v564_v55 = vmul.bf16 %v532_v46, %v500_v41  ;;  %v530_v57 = vld [vmem:[#allocation5 + $0xf8] sm:$0xff]  ;;  %v3268_v3 = vcombine.low %v565_v38, %v566_v39 }
  0x8d   : > { %2044 = vmatprep.subr.bf16.mxu1 %v3369_v26  ;;  %v436_v50 = vld [vmem:[#allocation7 + $0x8] sm:$0xff]  ;;  %v3365_v58 = vcombine.high %v469_v43, %v470_v44  ;;  %v467_v59 = vmul.bf16 %v435_v49, %v403_v47  ;;  %v561_v61 = vld [vmem:[#allocation8 + $0xf0] sm:$0xff]  ;;  %v562_v62 = vld [vmem:[#allocation8 + $0xf8] sm:$0xff]  ;;  %v3364_v4 = vcombine.low %v469_v43, %v470_v44 }
  0x8e   : > { %1212 = vmatpush1.bf16.msra.mxu0 %v3272_v35  ;;  %v468_v60 = vmul.bf16 %v436_v50, %v404_v48  ;;  %v433_v63 = vld [vmem:[#allocation2 + $0xf0] sm:$0xff]  ;;  %v434_v0 = vld [vmem:[#allocation2 + $0xf8] sm:$0xff]  ;;  %v3267_v5 = vcombine.high %v563_v54, %v564_v55  ;;  %v593_v6 = vmul.bf16 %v561_v61, %v529_v56  ;;  %v594_v7 = vmul.bf16 %v562_v62, %v530_v57  ;;  %v527_v8 = vld [vmem:[#allocation5 + $0xe0] sm:$0xff] }
  0x8f   : > { %1213 = vmatprep.subr.bf16.mxu0 %v3271_v37  ;;  %v465_v1 = vld [vmem:[#allocation7 + $0xf0] sm:$0xff]  ;;  %v466_v2 = vld [vmem:[#allocation7 + $0xf8] sm:$0xff]  ;;  %v528_v9 = vld [vmem:[#allocation5 + $0xe8] sm:$0xff]  ;;  %v3266_v19 = vcombine.low %v563_v54, %v564_v55 }
  0x90   : > { %2045 = vmatpush1.bf16.msra.mxu1 %v3368_v36  ;;  %v3363_v10 = vcombine.high %v467_v59, %v468_v60  ;;  %v497_v11 = vmul.bf16 %v465_v1, %v433_v63  ;;  %v498_v12 = vmul.bf16 %v466_v2, %v434_v0  ;;  %v559_v13 = vld [vmem:[#allocation8 + $0xe0] sm:$0xff]  ;;  %v560_v14 = vld [vmem:[#allocation8 + $0xe8] sm:$0xff]  ;;  %v3362_v20 = vcombine.low %v467_v59, %v468_v60  ;;  %v525_v24 = vld [vmem:[#allocation5 + $0xd0] sm:$0xff] }
  0x91   : > { %2046 = vmatprep.subr.bf16.mxu1 %v3367_v42  ;;  %v431_v15 = vld [vmem:[#allocation2 + $0xe0] sm:$0xff]  ;;  %v432_v16 = vld [vmem:[#allocation2 + $0xe8] sm:$0xff]  ;;  %v3297_v21 = vcombine.high %v593_v6, %v594_v7  ;;  %v591_v22 = vmul.bf16 %v559_v13, %v527_v8  ;;  %v592_v23 = vmul.bf16 %v560_v14, %v528_v9  ;;  %v526_v25 = vld [vmem:[#allocation5 + $0xd8] sm:$0xff]  ;;  %v3296_v35 = vcombine.low %v593_v6, %v594_v7 }
  0x92   : > { %1214 = vmatpush1.bf16.msra.mxu0 %v3270_v51  ;;  %v463_v17 = vld [vmem:[#allocation7 + $0xe0] sm:$0xff]  ;;  %v464_v18 = vld [vmem:[#allocation7 + $0xe8] sm:$0xff]  ;;  %v3393_v26 = vcombine.high %v497_v11, %v498_v12  ;;  %v557_v29 = vld [vmem:[#allocation8 + $0xd0] sm:$0xff]  ;;  %v3392_v36 = vcombine.low %v497_v11, %v498_v12 }
  0x93   : > { %1215 = vmatprep.subr.bf16.mxu0 %v3269_v53  ;;  %v495_v27 = vmul.bf16 %v463_v17, %v431_v15  ;;  %v496_v28 = vmul.bf16 %v464_v18, %v432_v16  ;;  %v558_v30 = vld [vmem:[#allocation8 + $0xd8] sm:$0xff]  ;;  %v429_v31 = vld [vmem:[#allocation2 + $0xd0] sm:$0xff]  ;;  %v3295_v37 = vcombine.high %v591_v22, %v592_v23  ;;  %v589_v38 = vmul.bf16 %v557_v29, %v525_v24  ;;  %v523_v40 = vld [vmem:[#allocation5 + $0xc0] sm:$0xff] }
  0x94   : > { %2047 = vmatpush1.bf16.msra.mxu1 %v3366_v52  ;;  %v430_v32 = vld [vmem:[#allocation2 + $0xd8] sm:$0xff]  ;;  %v461_v33 = vld [vmem:[#allocation7 + $0xd0] sm:$0xff]  ;;  %v590_v39 = vmul.bf16 %v558_v30, %v526_v25  ;;  %v524_v41 = vld [vmem:[#allocation5 + $0xc8] sm:$0xff]  ;;  %v3294_v51 = vcombine.low %v591_v22, %v592_v23 }
  0x95   : > { %2048 = vmatprep.subr.bf16.mxu1 %v3365_v58  ;;  %v462_v34 = vld [vmem:[#allocation7 + $0xd8] sm:$0xff]  ;;  %v3391_v42 = vcombine.high %v495_v27, %v496_v28  ;;  %v493_v43 = vmul.bf16 %v461_v33, %v429_v31  ;;  %v555_v45 = vld [vmem:[#allocation8 + $0xc0] sm:$0xff]  ;;  %v556_v46 = vld [vmem:[#allocation8 + $0xc8] sm:$0xff]  ;;  %v3390_v52 = vcombine.low %v495_v27, %v496_v28 }
  0x96   : > { %1216 = vmatpush1.bf16.msra.mxu0 %v3268_v3  ;;  %v494_v44 = vmul.bf16 %v462_v34, %v430_v32  ;;  %v427_v47 = vld [vmem:[#allocation2 + $0xc0] sm:$0xff]  ;;  %v428_v48 = vld [vmem:[#allocation2 + $0xc8] sm:$0xff]  ;;  %v3293_v53 = vcombine.high %v589_v38, %v590_v39  ;;  %v587_v54 = vmul.bf16 %v555_v45, %v523_v40  ;;  %v588_v55 = vmul.bf16 %v556_v46, %v524_v41  ;;  %v521_v56 = vld [vmem:[#allocation5 + $0xb0] sm:$0xff] }
  0x97   : > { %1217 = vmatprep.subr.bf16.mxu0 %v3267_v5  ;;  %v459_v49 = vld [vmem:[#allocation7 + $0xc0] sm:$0xff]  ;;  %v460_v50 = vld [vmem:[#allocation7 + $0xc8] sm:$0xff]  ;;  %v522_v57 = vld [vmem:[#allocation5 + $0xb8] sm:$0xff]  ;;  %v3292_v3 = vcombine.low %v589_v38, %v590_v39 }
  0x98   : > { %2049 = vmatpush1.bf16.msra.mxu1 %v3364_v4  ;;  %v553_v58 = vld [vmem:[#allocation8 + $0xb0] sm:$0xff]  ;;  %v3389_v59 = vcombine.high %v493_v43, %v494_v44  ;;  %v491_v60 = vmul.bf16 %v459_v49, %v427_v47  ;;  %v492_v61 = vmul.bf16 %v460_v50, %v428_v48  ;;  %v554_v62 = vld [vmem:[#allocation8 + $0xb8] sm:$0xff]  ;;  %v3388_v4 = vcombine.low %v493_v43, %v494_v44  ;;  %v519_v5 = vld [vmem:[#allocation5 + $0xa0] sm:$0xff] }
  0x99   : > { %2050 = vmatprep.subr.bf16.mxu1 %v3363_v10  ;;  %v425_v63 = vld [vmem:[#allocation2 + $0xb0] sm:$0xff]  ;;  %v426_v0 = vld [vmem:[#allocation2 + $0xb8] sm:$0xff]  ;;  %v520_v6 = vld [vmem:[#allocation5 + $0xa8] sm:$0xff]  ;;  %v3291_v10 = vcombine.high %v587_v54, %v588_v55  ;;  %v585_v11 = vmul.bf16 %v553_v58, %v521_v56  ;;  %v586_v12 = vmul.bf16 %v554_v62, %v522_v57 }
  0x9a   : > { %1218 = vmatpush1.bf16.msra.mxu0 %v3266_v19  ;;  %v457_v1 = vld [vmem:[#allocation7 + $0xb0] sm:$0xff]  ;;  %v458_v2 = vld [vmem:[#allocation7 + $0xb8] sm:$0xff]  ;;  %v551_v7 = vld [vmem:[#allocation8 + $0xa0] sm:$0xff]  ;;  %v3387_v16 = vcombine.high %v491_v60, %v492_v61  ;;  %v3386_v22 = vcombine.low %v491_v60, %v492_v61 }
  0x9b   : > { %1219 = vmatprep.subr.bf16.mxu0 %v3297_v21  ;;  %v552_v8 = vld [vmem:[#allocation8 + $0xa8] sm:$0xff]  ;;  %v423_v13 = vld [vmem:[#allocation2 + $0xa0] sm:$0xff]  ;;  %v489_v17 = vmul.bf16 %v457_v1, %v425_v63  ;;  %v490_v18 = vmul.bf16 %v458_v2, %v426_v0  ;;  %v3290_v21 = vcombine.low %v587_v54, %v588_v55  ;;  %v517_v23 = vld [vmem:[#allocation5 + $0x90] sm:$0xff]  ;;  %v3289_v27 = vcombine.high %v585_v11, %v586_v12 }
  0x9c   : > { %2051 = vmatpush1.bf16.msra.mxu1 %v3362_v20  ;;  %v3501_v9 = vld [vmem:[%s4127_s16 + $0x4] ss:$8 sps:$4 sm:$0xff]   ;;  %v518_v24 = vld [vmem:[#allocation5 + $0x98] sm:$0xff]  ;;  %v549_v25 = vld [vmem:[#allocation8 + $0x90] sm:$0xff]  ;;  %v583_v28 = vmul.bf16 %v551_v7, %v519_v5  ;;  %v584_v29 = vmul.bf16 %v552_v8, %v520_v6 }
  0x9d   : > { %2052 = vmatprep.subr.bf16.mxu1 %v3393_v26  ;;  %v424_v14 = vld [vmem:[#allocation2 + $0xa8] sm:$0xff]  ;;  %v455_v15 = vld [vmem:[#allocation7 + $0xa0] sm:$0xff]  ;;  %1235 = vmatprep.mubr.bf16.mxu0 %v3501_v9  ;;  %v550_v26 = vld [vmem:[#allocation8 + $0x98] sm:$0xff]  ;;  %v3385_v31 = vcombine.high %v489_v17, %v490_v18  ;;  %v3384_v38 = vcombine.low %v489_v17, %v490_v18  ;;  %v581_v44 = vmul.bf16 %v549_v25, %v517_v23 }
  0x9e   : > { %1220 = vmatpush2.bf16.msra.mxu0 %v3296_v35  ;;  %v3504_v19 = vld [vmem:[%s4152_s20 + $0x4] ss:$8 sps:$4 sm:$0xff]   ;;  %v421_v30 = vld [vmem:[#allocation2 + $0x90] sm:$0xff]  ;;  %v487_v32 = vmul.bf16 %v455_v15, %v423_v13  ;;  %v422_v34 = vld [vmem:[#allocation2 + $0x98] sm:$0xff]  ;;  %v3287_v43 = vcombine.high %v583_v28, %v584_v29  ;;  %v582_v45 = vmul.bf16 %v550_v26, %v518_v24 }
  0x9f   : > { %1221 = vmatprep.subr.bf16.mxu0 %v3295_v37  ;;  %v456_v20 = vld [vmem:[#allocation7 + $0xa8] sm:$0xff]  ;;  %2068 = vmatprep.mubr.bf16.mxu1 %v3504_v19  ;;  %v453_v35 = vld [vmem:[#allocation7 + $0x90] sm:$0xff]  ;;  %v3288_v37 = vcombine.low %v585_v11, %v586_v12  ;;  %v515_v39 = vld [vmem:[#allocation5 + $0x80] sm:$0xff] }
  0xa0   : > { %2053 = vmatpush2.bf16.msra.mxu1 %v3392_v36  ;;  %v488_v33 = vmul.bf16 %v456_v20, %v424_v14  ;;  %v454_v36 = vld [vmem:[#allocation7 + $0x98] sm:$0xff]  ;;  %v516_v40 = vld [vmem:[#allocation5 + $0x88] sm:$0xff]  ;;  %v547_v41 = vld [vmem:[#allocation8 + $0x80] sm:$0xff]  ;;  %v485_v49 = vmul.bf16 %v453_v35, %v421_v30  ;;  %v3285_v55 = vcombine.high %v581_v44, %v582_v45  ;;  %v3284_v61 = vcombine.low %v581_v44, %v582_v45 }
  0xa1   : > { %2054 = vmatprep.subr.bf16.mxu1 %v3391_v42  ;;  %v548_v42 = vld [vmem:[#allocation8 + $0x88] sm:$0xff]  ;;  %v419_v46 = vld [vmem:[#allocation2 + $0x80] sm:$0xff]  ;;  %v486_v50 = vmul.bf16 %v454_v36, %v422_v34  ;;  %v579_v56 = vmul.bf16 %v547_v41, %v515_v39  ;;  %v3505_v6 = vld [vmem:[%s4127_s16 + $0x14] ss:$8 sps:$4 sm:$0xff]  }
  0xa2   : > { %1222 = vmatpush2.bf16.msra.mxu0 %v3294_v51  ;;  %v420_v47 = vld [vmem:[#allocation2 + $0x88] sm:$0xff]  ;;  %v3383_v48 = vcombine.high %v487_v32, %v488_v33  ;;  %v451_v51 = vld [vmem:[#allocation7 + $0x80] sm:$0xff]  ;;  %v3382_v54 = vcombine.low %v487_v32, %v488_v33  ;;  %v580_v57 = vmul.bf16 %v548_v42, %v516_v40  ;;  %v3507_v7 = vld [vmem:[%s4152_s20 + $0x14] ss:$8 sps:$4 sm:$0xff]  }
  0xa3   : > { %1223 = vmatprep.subr.bf16.mxu0 %v3293_v53  ;;  %v3286_v53 = vcombine.low %v583_v28, %v584_v29  ;;  %v3381_v58 = vcombine.high %v485_v49, %v486_v50  ;;  %v3380_v62 = vcombine.low %v485_v49, %v486_v50  ;;  %v2389_v5 = vld [vmem:[%s4161_s11] sm:$0xff]  ;;  %v2390_v8 = vld [vmem:[%s4161_s11 + $0x8] sm:$0xff]  ;;  %v2391_v9 = vld [vmem:[%s4161_s11 + $0x10] sm:$0xff] }
  0xa4   : > { %2055 = vmatpush2.bf16.msra.mxu1 %v3390_v52  ;;  %v452_v52 = vld [vmem:[#allocation7 + $0x88] sm:$0xff]  ;;  %v3283_v63 = vcombine.high %v579_v56, %v580_v57  ;;  %v3282_v1 = vcombine.low %v579_v56, %v580_v57  ;;  %2455 = vperm.xlu0 %3497, %v2389_v5   ;;  %v3510_v11 = vld [vmem:[%s4152_s20 + $0x10] ss:$8 sps:$4 sm:$0xff]   ;;  %v2393_v12 = vld [vmem:[%s4161_s11 + $0x20] sm:$0xff] }
  0xa5   : > { %2056 = vmatprep.subr.bf16.mxu1 %v3389_v59  ;;  %v483_v59 = vmul.bf16 %v451_v51, %v419_v46  ;;  %v484_v60 = vmul.bf16 %v452_v52, %v420_v47  ;;  %2465 = vperm.xlu1 %3498, %v2391_v9   ;;  %v2392_v13 = vld [vmem:[%s4161_s11 + $0x18] sm:$0xff]  ;;  %v3511_v14 = vld [vmem:[%s4127_s16 + $0x24] ss:$8 sps:$4 sm:$0xff]   ;;  %v3515_v18 = vld [vmem:[%s4127_s16 + $0x20] ss:$8 sps:$4 sm:$0xff]  }
  0xa6   : > { %1224 = vmatpush2.bf16.msra.mxu0 %v3292_v3  ;;  %v3499_v3 = vld [vmem:[%s4127_s16] ss:$8 sps:$4 sm:$0xff]   ;;  %v3513_v15 = vld [vmem:[%s4152_s20 + $0x24] ss:$8 sps:$4 sm:$0xff]   ;;  %v3519_v23 = vld [vmem:[%s4152_s20 + $0x34] ss:$8 sps:$4 sm:$0xff]  }
  0xa7   : > { %1225 = vmatprep.subr.bf16.mxu0 %v3291_v10  ;;  %v3379_v0 = vcombine.high %v483_v59, %v484_v60  ;;  %v3378_v2 = vcombine.low %v483_v59, %v484_v60  ;;  %v3509_v10 = vld [vmem:[%s4127_s16 + $0x10] ss:$8 sps:$4 sm:$0xff]   ;;  %v2394_v17 = vld [vmem:[%s4161_s11 + $0x28] sm:$0xff]  ;;  %v2397_v20 = vld [vmem:[%s4161_s11 + $0x40] sm:$0xff] }
  0xa8   : > { %2057 = vmatpush2.bf16.msra.mxu1 %v3388_v4  ;;  %v3502_v4 = vld [vmem:[%s4152_s20] ss:$8 sps:$4 sm:$0xff]   ;;  %2460 = vperm.xlu0 %3497, %v2390_v8   ;;  %v2399_v24 = vld [vmem:[%s4161_s11 + $0x50] sm:$0xff]  ;;  %v2400_v29 = vld [vmem:[%s4161_s11 + $0x58] sm:$0xff] }
  0xa9   : > { %2058 = vmatprep.subr.bf16.mxu1 %v3387_v16  ;;  %2470 = vperm.xlu1 %3498, %v2392_v13   ;;  %v2395_v16 = vld [vmem:[%s4161_s11 + $0x30] sm:$0xff]  ;;  %v3516_v19 = vld [vmem:[%s4152_s20 + $0x20] ss:$8 sps:$4 sm:$0xff]   ;;  %v3523_v30 = vld [vmem:[%s4127_s16 + $0x44] ss:$8 sps:$4 sm:$0xff]  }
  0xaa   : > { %1226 = vmatpush2.bf16.msra.mxu0 %v3290_v21  ;;  %v2396_v21 = vld [vmem:[%s4161_s11 + $0x38] sm:$0xff]  ;;  %v2398_v25 = vld [vmem:[%s4161_s11 + $0x48] sm:$0xff]  ;;  %v2401_v28 = vld [vmem:[%s4161_s11 + $0x60] sm:$0xff] }
  0xab   : > { %1227 = vmatprep.subr.bf16.mxu0 %v3289_v27  ;;  %v3521_v26 = vld [vmem:[%s4127_s16 + $0x30] ss:$8 sps:$4 sm:$0xff]   ;;  %v2402_v33 = vld [vmem:[%s4161_s11 + $0x68] sm:$0xff]  ;;  %v2405_v36 = vld [vmem:[%s4161_s11 + $0x80] sm:$0xff] }
  0xac   : > { %2059 = vmatpush2.bf16.msra.mxu1 %v3386_v22  ;;  %2475 = vperm.xlu0 %3497, %v2393_v12   ;;  %v3517_v22 = vld [vmem:[%s4127_s16 + $0x34] ss:$8 sps:$4 sm:$0xff]   ;;  %v3522_v27 = vld [vmem:[%s4152_s20 + $0x30] ss:$8 sps:$4 sm:$0xff]   ;;  %v3527_v34 = vld [vmem:[%s4127_s16 + $0x40] ss:$8 sps:$4 sm:$0xff]  }
  0xad   : > { %2060 = vmatprep.subr.bf16.mxu1 %v3385_v31  ;;  %2480 = vperm.xlu1 %3498, %v2394_v17   ;;  %v3525_v31 = vld [vmem:[%s4152_s20 + $0x44] ss:$8 sps:$4 sm:$0xff]   ;;  %v2403_v32 = vld [vmem:[%s4161_s11 + $0x70] sm:$0xff]  ;;  %v3528_v35 = vld [vmem:[%s4152_s20 + $0x40] ss:$8 sps:$4 sm:$0xff]  }
  0xae   : > { %1228 = vmatpush2.bf16.msra.mxu0 %v3288_v37  ;;  %v2404_v37 = vld [vmem:[%s4161_s11 + $0x78] sm:$0xff]  ;;  %v2407_v40 = vld [vmem:[%s4161_s11 + $0x90] sm:$0xff]  ;;  %v2406_v41 = vld [vmem:[%s4161_s11 + $0x88] sm:$0xff] }
  0xaf   : > { %1229 = vmatprep.subr.bf16.mxu0 %v3287_v43  ;;  %v3531_v39 = vld [vmem:[%s4152_s20 + $0x54] ss:$8 sps:$4 sm:$0xff]   ;;  %v3533_v42 = vld [vmem:[%s4127_s16 + $0x50] ss:$8 sps:$4 sm:$0xff]   ;;  %v2409_v44 = vld [vmem:[%s4161_s11 + $0xa0] sm:$0xff] }
  0xb0   : > { %2061 = vmatpush2.bf16.msra.mxu1 %v3384_v38  ;;  %2485 = vperm.xlu0 %3497, %v2395_v16   ;;  %v3529_v38 = vld [vmem:[%s4127_s16 + $0x54] ss:$8 sps:$4 sm:$0xff]   ;;  %v3534_v43 = vld [vmem:[%s4152_s20 + $0x50] ss:$8 sps:$4 sm:$0xff]   ;;  %v3535_v46 = vld [vmem:[%s4127_s16 + $0x64] ss:$8 sps:$4 sm:$0xff]  }
  0xb1   : > { %2062 = vmatprep.subr.bf16.mxu1 %v3383_v48  ;;  %2490 = vperm.xlu1 %3498, %v2396_v21   ;;  %v2408_v45 = vld [vmem:[%s4161_s11 + $0x98] sm:$0xff]  ;;  %v3537_v47 = vld [vmem:[%s4152_s20 + $0x64] ss:$8 sps:$4 sm:$0xff]   ;;  %v2411_v48 = vld [vmem:[%s4161_s11 + $0xb0] sm:$0xff] }
  0xb2   : > { %1230 = vmatpush2.bf16.msra.mxu0 %v3286_v53  ;;  %v2410_v49 = vld [vmem:[%s4161_s11 + $0xa8] sm:$0xff]  ;;  %v2413_v52 = vld [vmem:[%s4161_s11 + $0xc0] sm:$0xff]  ;;  %v2412_v53 = vld [vmem:[%s4161_s11 + $0xb8] sm:$0xff] }
  0xb3   : > { %1231 = vmatprep.subr.bf16.mxu0 %v3285_v55  ;;  %v3539_v50 = vld [vmem:[%s4127_s16 + $0x60] ss:$8 sps:$4 sm:$0xff]   ;;  %v3543_v55 = vld [vmem:[%s4152_s20 + $0x74] ss:$8 sps:$4 sm:$0xff]   ;;  %v3546_v59 = vld [vmem:[%s4152_s20 + $0x70] ss:$8 sps:$4 sm:$0xff]  }
  0xb4   : > { %2063 = vmatpush2.bf16.msra.mxu1 %v3382_v54  ;;  %2495 = vperm.xlu0 %3497, %v2397_v20   ;;  %v3540_v51 = vld [vmem:[%s4152_s20 + $0x60] ss:$8 sps:$4 sm:$0xff]   ;;  %v3541_v54 = vld [vmem:[%s4127_s16 + $0x74] ss:$8 sps:$4 sm:$0xff]   ;;  %v3547_v60 = vld [vmem:[%s4127_s16 + $0x84] ss:$8 sps:$4 sm:$0xff]  }
  0xb5   : > { %2064 = vmatprep.subr.bf16.mxu1 %v3381_v58  ;;  %2500 = vperm.xlu1 %3498, %v2398_v25   ;;  %v2415_v56 = vld [vmem:[%s4161_s11 + $0xd0] sm:$0xff]  ;;  %v2414_v57 = vld [vmem:[%s4161_s11 + $0xc8] sm:$0xff]  ;;  %v2424_v12 = vld [vmem:[%s4161_s11 + $0x118] sm:$0xff] }
  0xb6   : > { %1232 = vmatpush2.bf16.msra.mxu0 %v3284_v61  ;;  %v3545_v58 = vld [vmem:[%s4127_s16 + $0x70] ss:$8 sps:$4 sm:$0xff]   ;;  %v2417_v61 = vld [vmem:[%s4161_s11 + $0xe0] sm:$0xff]  ;;  %v2422_v8 = vld [vmem:[%s4161_s11 + $0x108] sm:$0xff] }
  0xb7   : > { %1233 = vmatprep.subr.bf16.mxu0 %v3283_v63  ;;  %v3549_v63 = vld [vmem:[%s4152_s20 + $0x84] ss:$8 sps:$4 sm:$0xff]   ;;  %v3552_v5 = vld [vmem:[%s4152_s20 + $0x80] ss:$8 sps:$4 sm:$0xff]   ;;  %v2423_v9 = vld [vmem:[%s4161_s11 + $0x110] sm:$0xff] }
  0xb8   : > { %2065 = vmatpush2.bf16.msra.mxu1 %v3380_v62  ;;  %2505 = vperm.xlu0 %3497, %v2399_v24   ;;  %v2416_v62 = vld [vmem:[%s4161_s11 + $0xd8] sm:$0xff]  ;;  %v2427_v16 = vld [vmem:[%s4161_s11 + $0x130] sm:$0xff]  ;;  %v2426_v17 = vld [vmem:[%s4161_s11 + $0x128] sm:$0xff] }
  0xb9   : > { %2066 = vmatprep.subr.bf16.mxu1 %v3379_v0  ;;  %2510 = vperm.xlu1 %3498, %v2400_v29   ;;  %v2418_v0 = vld [vmem:[%s4161_s11 + $0xe8] sm:$0xff]  ;;  %v3558_v13 = vld [vmem:[%s4152_s20 + $0x90] ss:$8 sps:$4 sm:$0xff]  }
  0xba   : > { %1234 = vmatpush2.bf16.msra.mxu0 %v3282_v1  ;;  %v2419_v1 = vld [vmem:[%s4161_s11 + $0xf0] sm:$0xff]  ;;  %v2428_v20 = vld [vmem:[%s4161_s11 + $0x138] sm:$0xff]  ;;  %v3564_v21 = vld [vmem:[%s4152_s20 + $0xa0] ss:$8 sps:$4 sm:$0xff]  }
  0xbb   : > { %v2431_v24 = vld [vmem:[%s4161_s11 + $0x150] sm:$0xff]  ;;  %v2430_v25 = vld [vmem:[%s4161_s11 + $0x148] sm:$0xff] }
  0xbc   : > { %2067 = vmatpush2.bf16.msra.mxu1 %v3378_v2  ;;  %2515 = vperm.xlu0 %3497, %v2401_v28   ;;  %v3551_v2 = vld [vmem:[%s4127_s16 + $0x80] ss:$8 sps:$4 sm:$0xff]   ;;  %v2432_v28 = vld [vmem:[%s4161_s11 + $0x158] sm:$0xff] }
  0xbd   : > { %1236 = vmatmul.mubr.bf16.vlgmr.msra.gmra.mxu0 %v3499_v3  ;;  %2520 = vperm.xlu1 %3498, %v2402_v33   ;;  %v2420_v3 = vld [vmem:[%s4161_s11 + $0xf8] sm:$0xff]  ;;  %v2434_v33 = vld [vmem:[%s4161_s11 + $0x168] sm:$0xff] }
  0xbe   : > { %1245 = vmatprep.mubr.bf16.mxu0 %v3505_v6  ;;  %v3553_v6 = vld [vmem:[%s4127_s16 + $0x94] ss:$8 sps:$4 sm:$0xff]   ;;  %v3570_v29 = vld [vmem:[%s4152_s20 + $0xb0] ss:$8 sps:$4 sm:$0xff]  }
  0xbf   : > { %2069 = vmatmul.mubr.bf16.vlgmr.msra.gmra.mxu1 %v3502_v4  ;;  %v2421_v4 = vld [vmem:[%s4161_s11 + $0x100] sm:$0xff] }
  0xc0   : > { %2078 = vmatprep.mubr.bf16.mxu1 %v3507_v7  ;;  %2525 = vperm.xlu0 %3497, %v2403_v32   ;;  %v3555_v7 = vld [vmem:[%s4152_s20 + $0x94] ss:$8 sps:$4 sm:$0xff]  }
  0xc1   : > { %2530 = vperm.xlu1 %3498, %v2404_v37   ;;  %v2435_v32 = vld [vmem:[%s4161_s11 + $0x170] sm:$0xff]  ;;  %v3576_v37 = vld [vmem:[%s4152_s20 + $0xc0] ss:$8 sps:$4 sm:$0xff]  }
  0xc4   : > { %2535 = vperm.xlu0 %3497, %v2405_v36   ;;  %v2436_v36 = vld [vmem:[%s4161_s11 + $0x178] sm:$0xff] }
  0xc5   : > { %1246 = vmatmul.mubr.bf16.gmra.mxu0 %v3509_v10  ;;  %2540 = vperm.xlu1 %3498, %v2406_v41   ;;  %v2425_v10 = vld [vmem:[%s4161_s11 + $0x120] sm:$0xff]  ;;  %v2438_v41 = vld [vmem:[%s4161_s11 + $0x188] sm:$0xff] }
  0xc6   : > { %1255 = vmatprep.mubr.bf16.mxu0 %v3511_v14  ;;  %v3559_v14 = vld [vmem:[%s4127_s16 + $0xa4] ss:$8 sps:$4 sm:$0xff]  }
  0xc7   : > { %2079 = vmatmul.mubr.bf16.gmra.mxu1 %v3510_v11  ;;  %v3557_v11 = vld [vmem:[%s4127_s16 + $0x90] ss:$8 sps:$4 sm:$0xff]  }
  0xc8   : > { %2088 = vmatprep.mubr.bf16.mxu1 %v3513_v15  ;;  %2545 = vperm.xlu0 %3497, %v2407_v40   ;;  %v3561_v15 = vld [vmem:[%s4152_s20 + $0xa4] ss:$8 sps:$4 sm:$0xff]   ;;  %v2439_v40 = vld [vmem:[%s4161_s11 + $0x190] sm:$0xff] }
  0xc9   : > { %2550 = vperm.xlu1 %3498, %v2408_v45   ;;  %v3582_v45 = vld [vmem:[%s4152_s20 + $0xd0] ss:$8 sps:$4 sm:$0xff]  }
  0xcc   : > { %2555 = vperm.xlu0 %3497, %v2409_v44   ;;  %v2440_v44 = vld [vmem:[%s4161_s11 + $0x198] sm:$0xff] }
  0xcd   : > { %1256 = vmatmul.mubr.bf16.gmra.mxu0 %v3515_v18  ;;  %2560 = vperm.xlu1 %3498, %v2410_v49   ;;  %v2429_v18 = vld [vmem:[%s4161_s11 + $0x140] sm:$0xff]  ;;  %v2442_v49 = vld [vmem:[%s4161_s11 + $0x1a8] sm:$0xff] }
  0xce   : > { %1265 = vmatprep.mubr.bf16.mxu0 %v3517_v22  ;;  %v3565_v22 = vld [vmem:[%s4127_s16 + $0xb4] ss:$8 sps:$4 sm:$0xff]  }
  0xcf   : > { %2089 = vmatmul.mubr.bf16.gmra.mxu1 %v3516_v19  ;;  %v3563_v19 = vld [vmem:[%s4127_s16 + $0xa0] ss:$8 sps:$4 sm:$0xff]  }
  0xd0   : > { %2098 = vmatprep.mubr.bf16.mxu1 %v3519_v23  ;;  %2565 = vperm.xlu0 %3497, %v2411_v48   ;;  %v3567_v23 = vld [vmem:[%s4152_s20 + $0xb4] ss:$8 sps:$4 sm:$0xff]  }
  0xd1   : > { %2570 = vperm.xlu1 %3498, %v2412_v53   ;;  %v2443_v48 = vld [vmem:[%s4161_s11 + $0x1b0] sm:$0xff]  ;;  %v3588_v53 = vld [vmem:[%s4152_s20 + $0xe0] ss:$8 sps:$4 sm:$0xff]  }
  0xd4   : > { %2575 = vperm.xlu0 %3497, %v2413_v52   ;;  %v2444_v52 = vld [vmem:[%s4161_s11 + $0x1b8] sm:$0xff] }
  0xd5   : > { %1266 = vmatmul.mubr.bf16.gmra.mxu0 %v3521_v26  ;;  %2580 = vperm.xlu1 %3498, %v2414_v57   ;;  %v2433_v26 = vld [vmem:[%s4161_s11 + $0x160] sm:$0xff]  ;;  %v2446_v57 = vld [vmem:[%s4161_s11 + $0x1c8] sm:$0xff] }
  0xd6   : > { %1275 = vmatprep.mubr.bf16.mxu0 %v3523_v30  ;;  %v3571_v30 = vld [vmem:[%s4127_s16 + $0xc4] ss:$8 sps:$4 sm:$0xff]  }
  0xd7   : > { %2099 = vmatmul.mubr.bf16.gmra.mxu1 %v3522_v27  ;;  %v3569_v27 = vld [vmem:[%s4127_s16 + $0xb0] ss:$8 sps:$4 sm:$0xff]  }
  0xd8   : > { %2108 = vmatprep.mubr.bf16.mxu1 %v3525_v31  ;;  %2585 = vperm.xlu0 %3497, %v2415_v56   ;;  %v3573_v31 = vld [vmem:[%s4152_s20 + $0xc4] ss:$8 sps:$4 sm:$0xff]   ;;  %v2447_v56 = vld [vmem:[%s4161_s11 + $0x1d0] sm:$0xff] }
  0xd9   : > { %2590 = vperm.xlu1 %3498, %v2416_v62   ;;  %v3595_v62 = vld [vmem:[%s4127_s16 + $0x104] ss:$8 sps:$4 sm:$0xff]  }
  0xdc   : > { %2595 = vperm.xlu0 %3497, %v2417_v61   ;;  %v3594_v61 = vld [vmem:[%s4152_s20 + $0xf0] ss:$8 sps:$4 sm:$0xff]  }
  0xdd   : > { %1276 = vmatmul.mubr.bf16.gmra.mxu0 %v3527_v34  ;;  %2600 = vperm.xlu1 %3498, %v2418_v0   ;;  %v2437_v34 = vld [vmem:[%s4161_s11 + $0x180] sm:$0xff]  ;;  %v2451_v0 = vld [vmem:[%s4161_s11 + $0x1f0] sm:$0xff] }
  0xde   : > { %1285 = vmatprep.mubr.bf16.mxu0 %v3529_v38  ;;  %v3577_v38 = vld [vmem:[%s4127_s16 + $0xd4] ss:$8 sps:$4 sm:$0xff]  }
  0xdf   : > { %2109 = vmatmul.mubr.bf16.gmra.mxu1 %v3528_v35  ;;  %v3575_v35 = vld [vmem:[%s4127_s16 + $0xc0] ss:$8 sps:$4 sm:$0xff]  }
  0xe0   : > { %2118 = vmatprep.mubr.bf16.mxu1 %v3531_v39  ;;  %2605 = vperm.xlu0 %3497, %v2419_v1   ;;  %v3579_v39 = vld [vmem:[%s4152_s20 + $0xd4] ss:$8 sps:$4 sm:$0xff]   ;;  %v2450_v1 = vld [vmem:[%s4161_s11 + $0x1e8] sm:$0xff] }
  0xe1   : > { %2610 = vperm.xlu1 %3498, %v2420_v3   ;;  %v2452_v3 = vld [vmem:[%s4161_s11 + $0x1f8] sm:$0xff] }
  0xe4   : > { %2615 = vperm.xlu0 %3497, %v2421_v4   ;;  %v3600_v4 = vld [vmem:[%s4152_s20 + $0x100] ss:$8 sps:$4 sm:$0xff]  }
  0xe5   : > { %1286 = vmatmul.mubr.bf16.gmra.mxu0 %v3533_v42  ;;  %2620 = vperm.xlu1 %3498, %v2422_v8   ;;  %v2441_v42 = vld [vmem:[%s4161_s11 + $0x1a0] sm:$0xff]  ;;  %v3606_v8 = vld [vmem:[%s4152_s20 + $0x110] ss:$8 sps:$4 sm:$0xff]  }
  0xe6   : > { %1295 = vmatprep.mubr.bf16.mxu0 %v3535_v46  ;;  %v3583_v46 = vld [vmem:[%s4127_s16 + $0xe4] ss:$8 sps:$4 sm:$0xff]  }
  0xe7   : > { %2119 = vmatmul.mubr.bf16.gmra.mxu1 %v3534_v43  ;;  %v3581_v43 = vld [vmem:[%s4127_s16 + $0xd0] ss:$8 sps:$4 sm:$0xff]  }
  0xe8   : > { %2128 = vmatprep.mubr.bf16.mxu1 %v3537_v47  ;;  %2625 = vperm.xlu0 %3497, %v2423_v9   ;;  %v3585_v47 = vld [vmem:[%s4152_s20 + $0xe4] ss:$8 sps:$4 sm:$0xff]  }
  0xe9   : > { %2630 = vperm.xlu1 %3498, %v2424_v12   ;;  %v3607_v9 = vld [vmem:[%s4127_s16 + $0x124] ss:$8 sps:$4 sm:$0xff]   ;;  %v3612_v12 = vld [vmem:[%s4152_s20 + $0x120] ss:$8 sps:$4 sm:$0xff]  }
  0xec   : > { %2635 = vperm.xlu0 %3497, %v2425_v10   ;;  %v3609_v10 = vld [vmem:[%s4152_s20 + $0x124] ss:$8 sps:$4 sm:$0xff]  }
  0xed   : > { %1296 = vmatmul.mubr.bf16.gmra.mxu0 %v3539_v50  ;;  %2640 = vperm.xlu1 %3498, %v2426_v17   ;;  %v2445_v50 = vld [vmem:[%s4161_s11 + $0x1c0] sm:$0xff] }
  0xee   : > { %1305 = vmatprep.mubr.bf16.mxu0 %v3541_v54  ;;  %v3589_v54 = vld [vmem:[%s4127_s16 + $0xf4] ss:$8 sps:$4 sm:$0xff]   ;;  %v3619_v17 = vld [vmem:[%s4127_s16 + $0x144] ss:$8 sps:$4 sm:$0xff]  }
  0xef   : > { %2129 = vmatmul.mubr.bf16.gmra.mxu1 %v3540_v51  ;;  %v3587_v51 = vld [vmem:[%s4127_s16 + $0xe0] ss:$8 sps:$4 sm:$0xff]  }
  0xf0   : > { %2138 = vmatprep.mubr.bf16.mxu1 %v3543_v55  ;;  %2645 = vperm.xlu0 %3497, %v2427_v16   ;;  %v3591_v55 = vld [vmem:[%s4152_s20 + $0xf4] ss:$8 sps:$4 sm:$0xff]   ;;  %v3618_v16 = vld [vmem:[%s4152_s20 + $0x130] ss:$8 sps:$4 sm:$0xff]  }
  0xf1   : > { %2650 = vperm.xlu1 %3498, %v2428_v20   ;;  %v3624_v20 = vld [vmem:[%s4152_s20 + $0x140] ss:$8 sps:$4 sm:$0xff]  }
  0xf4   : > { %2655 = vperm.xlu0 %3497, %v2429_v18   ;;  %v3621_v18 = vld [vmem:[%s4152_s20 + $0x144] ss:$8 sps:$4 sm:$0xff]  }
  0xf5   : > { %1306 = vmatmul.mubr.bf16.gmra.mxu0 %v3545_v58  ;;  %2660 = vperm.xlu1 %3498, %v2430_v25   ;;  %v2449_v58 = vld [vmem:[%s4161_s11 + $0x1e0] sm:$0xff] }
  0xf6   : > { %1315 = vmatprep.mubr.bf16.mxu0 %v3547_v60  ;;  %v2448_v60 = vld [vmem:[%s4161_s11 + $0x1d8] sm:$0xff]  ;;  %v3631_v25 = vld [vmem:[%s4127_s16 + $0x164] ss:$8 sps:$4 sm:$0xff]  }
  0xf7   : > { %2139 = vmatmul.mubr.bf16.gmra.mxu1 %v3546_v59  ;;  %v3593_v59 = vld [vmem:[%s4127_s16 + $0xf0] ss:$8 sps:$4 sm:$0xff]  }
  0xf8   : > { %2148 = vmatprep.mubr.bf16.mxu1 %v3549_v63  ;;  %2665 = vperm.xlu0 %3497, %v2431_v24   ;;  %v3597_v63 = vld [vmem:[%s4152_s20 + $0x104] ss:$8 sps:$4 sm:$0xff]   ;;  %v3630_v24 = vld [vmem:[%s4152_s20 + $0x150] ss:$8 sps:$4 sm:$0xff]  }
  0xf9   : > { %2670 = vperm.xlu1 %3498, %v2432_v28   ;;  %v3636_v28 = vld [vmem:[%s4152_s20 + $0x160] ss:$8 sps:$4 sm:$0xff]  }
  0xfc   : > { %2675 = vperm.xlu0 %3497, %v2433_v26   ;;  %v3633_v26 = vld [vmem:[%s4152_s20 + $0x164] ss:$8 sps:$4 sm:$0xff]  }
  0xfd   : > { %1316 = vmatmul.mubr.bf16.gmra.mxu0 %v3551_v2  ;;  %2680 = vperm.xlu1 %3498, %v2434_v33   ;;  %v3599_v2 = vld [vmem:[%s4127_s16 + $0x100] ss:$8 sps:$4 sm:$0xff]   ;;  %v3643_v33 = vld [vmem:[%s4127_s16 + $0x184] ss:$8 sps:$4 sm:$0xff]  }
  0xfe   : > { %1325 = vmatprep.mubr.bf16.mxu0 %v3553_v6  ;;  %v3603_v6 = vld [vmem:[%s4152_s20 + $0x114] ss:$8 sps:$4 sm:$0xff]  }
  0xff   : > { %2149 = vmatmul.mubr.bf16.gmra.mxu1 %v3552_v5  ;;  %v3601_v5 = vld [vmem:[%s4127_s16 + $0x114] ss:$8 sps:$4 sm:$0xff]  }
 0x100   : > { %2158 = vmatprep.mubr.bf16.mxu1 %v3555_v7  ;;  %2685 = vperm.xlu0 %3497, %v2435_v32   ;;  %v3605_v7 = vld [vmem:[%s4127_s16 + $0x110] ss:$8 sps:$4 sm:$0xff]  }
 0x101   : > { %2690 = vperm.xlu1 %3498, %v2436_v36   ;;  %v3642_v32 = vld [vmem:[%s4152_s20 + $0x170] ss:$8 sps:$4 sm:$0xff]   ;;  %v3648_v36 = vld [vmem:[%s4152_s20 + $0x180] ss:$8 sps:$4 sm:$0xff]  }
 0x104   : > { %2695 = vperm.xlu0 %3497, %v2437_v34   ;;  %v3645_v34 = vld [vmem:[%s4152_s20 + $0x184] ss:$8 sps:$4 sm:$0xff]  }
 0x105   : > { %1326 = vmatmul.mubr.bf16.gmra.mxu0 %v3557_v11  ;;  %2700 = vperm.xlu1 %3498, %v2438_v41   ;;  %v3611_v11 = vld [vmem:[%s4127_s16 + $0x120] ss:$8 sps:$4 sm:$0xff]  }
 0x106   : > { %1335 = vmatprep.mubr.bf16.mxu0 %v3559_v14  ;;  %v3615_v14 = vld [vmem:[%s4152_s20 + $0x134] ss:$8 sps:$4 sm:$0xff]  }
 0x107   : > { %2159 = vmatmul.mubr.bf16.gmra.mxu1 %v3558_v13  ;;  %v3613_v13 = vld [vmem:[%s4127_s16 + $0x134] ss:$8 sps:$4 sm:$0xff]  }
 0x108   : > { %2168 = vmatprep.mubr.bf16.mxu1 %v3561_v15  ;;  %2705 = vperm.xlu0 %3497, %v2439_v40   ;;  %v3617_v15 = vld [vmem:[%s4127_s16 + $0x130] ss:$8 sps:$4 sm:$0xff]  }
 0x109   : > { %2710 = vperm.xlu1 %3498, %v2440_v44  }
 0x10c   : > { %2715 = vperm.xlu0 %3497, %v2441_v42  }
 0x10d   : > { %1336 = vmatmul.mubr.bf16.gmra.mxu0 %v3563_v19  ;;  %2720 = vperm.xlu1 %3498, %v2442_v49   ;;  %v3623_v19 = vld [vmem:[%s4127_s16 + $0x140] ss:$8 sps:$4 sm:$0xff]  }
 0x10e   : > { %1345 = vmatprep.mubr.bf16.mxu0 %v3565_v22  ;;  %v3627_v22 = vld [vmem:[%s4152_s20 + $0x154] ss:$8 sps:$4 sm:$0xff]  }
 0x10f   : > { %2169 = vmatmul.mubr.bf16.gmra.mxu1 %v3564_v21  ;;  %v3625_v21 = vld [vmem:[%s4127_s16 + $0x154] ss:$8 sps:$4 sm:$0xff]  }
 0x110   : > { %2178 = vmatprep.mubr.bf16.mxu1 %v3567_v23  ;;  %2725 = vperm.xlu0 %3497, %v2443_v48   ;;  %v3629_v23 = vld [vmem:[%s4127_s16 + $0x150] ss:$8 sps:$4 sm:$0xff]  }
 0x111   : > { %2730 = vperm.xlu1 %3498, %v2444_v52   ;;  %v3653_v48 = vld [vmem:[%s4127_s16 + $0x190] ss:$8 sps:$4 sm:$0xff]   ;;  %v3655_v52 = vld [vmem:[%s4127_s16 + $0x1a4] ss:$8 sps:$4 sm:$0xff]  }
 0x114   : > { %2735 = vperm.xlu0 %3497, %v2445_v50  }
 0x115   : > { %1346 = vmatmul.mubr.bf16.gmra.mxu0 %v3569_v27  ;;  %2740 = vperm.xlu1 %3498, %v2446_v57   ;;  %v3635_v27 = vld [vmem:[%s4127_s16 + $0x160] ss:$8 sps:$4 sm:$0xff]  }
 0x116   : > { %1355 = vmatprep.mubr.bf16.mxu0 %v3571_v30  ;;  %v3639_v30 = vld [vmem:[%s4152_s20 + $0x174] ss:$8 sps:$4 sm:$0xff]  }
 0x117   : > { %2179 = vmatmul.mubr.bf16.gmra.mxu1 %v3570_v29  ;;  %v3637_v29 = vld [vmem:[%s4127_s16 + $0x174] ss:$8 sps:$4 sm:$0xff]  }
 0x118   : > { %2188 = vmatprep.mubr.bf16.mxu1 %v3573_v31  ;;  %2745 = vperm.xlu0 %3497, %v2447_v56   ;;  %v3641_v31 = vld [vmem:[%s4127_s16 + $0x170] ss:$8 sps:$4 sm:$0xff]   ;;  %v3657_v56 = vld [vmem:[%s4152_s20 + $0x1a4] ss:$8 sps:$4 sm:$0xff]  }
 0x119   : > { %2750 = vperm.xlu1 %3498, %v2448_v60  }
 0x11c   : > { %2755 = vperm.xlu0 %3497, %v2449_v58  }
 0x11d   : > { %1356 = vmatmul.mubr.bf16.gmra.mxu0 %v3575_v35  ;;  %2760 = vperm.xlu1 %3498, %v2450_v1   ;;  %v3647_v35 = vld [vmem:[%s4127_s16 + $0x180] ss:$8 sps:$4 sm:$0xff]  }
 0x11e   : > { %1365 = vmatprep.mubr.bf16.mxu0 %v3577_v38  ;;  %v3651_v38 = vld [vmem:[%s4152_s20 + $0x194] ss:$8 sps:$4 sm:$0xff]  }
 0x11f   : > { %2189 = vmatmul.mubr.bf16.gmra.mxu1 %v3576_v37  ;;  %v3649_v37 = vld [vmem:[%s4127_s16 + $0x194] ss:$8 sps:$4 sm:$0xff]  }
 0x120   : > { %2198 = vmatprep.mubr.bf16.mxu1 %v3579_v39  ;;  %2765 = vperm.xlu0 %3497, %v2451_v0   ;;  %v2456_v39 = vpop.permute.xlu0 %2455 }
 0x121   : > { %2770 = vperm.xlu1 %3498, %v2452_v3  }
 0x124   : > { %v2461_v50 = vpop.permute.xlu0 %2460 }
 0x125   : > { %1366 = vmatmul.mubr.bf16.gmra.mxu0 %v3581_v43 }
 0x126   : > { %1375 = vmatprep.mubr.bf16.mxu0 %v3583_v46 }
 0x127   : > { %2199 = vmatmul.mubr.bf16.gmra.mxu1 %v3582_v45 }
 0x128   : > { %2208 = vmatprep.mubr.bf16.mxu1 %v3585_v47 }
 0x12d   : > { %1376 = vmatmul.mubr.bf16.gmra.mxu0 %v3587_v51  ;;  %v3654_v51 = vld [vmem:[%s4152_s20 + $0x190] ss:$8 sps:$4 sm:$0xff]  }
 0x12e   : > { %1385 = vmatprep.mubr.bf16.mxu0 %v3589_v54 }
 0x12f   : > { %2209 = vmatmul.mubr.bf16.gmra.mxu1 %v3588_v53 }
 0x130   : > { %2218 = vmatprep.mubr.bf16.mxu1 %v3591_v55 }
 0x135   : > { %1386 = vmatmul.mubr.bf16.gmra.mxu0 %v3593_v59 }
 0x136   : > { %1395 = vmatprep.mubr.bf16.mxu0 %v3595_v62 }
 0x137   : > { %2219 = vmatmul.mubr.bf16.gmra.mxu1 %v3594_v61  ;;  %v2466_v61 = vpop.permute.xlu1 %2465 }
 0x138   : > { %2228 = vmatprep.mubr.bf16.mxu1 %v3597_v63 }
 0x13d   : > { %1396 = vmatmul.mubr.bf16.gmra.mxu0 %v3599_v2 }
 0x13e   : > { %1405 = vmatprep.mubr.bf16.mxu0 %v3601_v5 }
 0x13f   : > { %2229 = vmatmul.mubr.bf16.gmra.mxu1 %v3600_v4 }
 0x140   : > { %2238 = vmatprep.mubr.bf16.mxu1 %v3603_v6  ;;  %v3659_v6 = vld [vmem:[%s4127_s16 + $0x1a0] ss:$8 sps:$4 sm:$0xff]  }
 0x145   : > { %1406 = vmatmul.mubr.bf16.gmra.mxu0 %v3605_v7 }
 0x146   : > { %1415 = vmatprep.mubr.bf16.mxu0 %v3607_v9  ;;  %v3661_v9 = vld [vmem:[%s4127_s16 + $0x1b4] ss:$8 sps:$4 sm:$0xff]  }
 0x147   : > { %2239 = vmatmul.mubr.bf16.gmra.mxu1 %v3606_v8  ;;  %v3660_v8 = vld [vmem:[%s4152_s20 + $0x1a0] ss:$8 sps:$4 sm:$0xff]  }
 0x148   : > { %2248 = vmatprep.mubr.bf16.mxu1 %v3609_v10 }
 0x14d   : > { %1416 = vmatmul.mubr.bf16.gmra.mxu0 %v3611_v11 }
 0x14e   : > { %1425 = vmatprep.mubr.bf16.mxu0 %v3613_v13  ;;  %v3663_v13 = vld [vmem:[%s4152_s20 + $0x1b4] ss:$8 sps:$4 sm:$0xff]  }
 0x14f   : > { %2249 = vmatmul.mubr.bf16.gmra.mxu1 %v3612_v12 }
 0x150   : > { %2258 = vmatprep.mubr.bf16.mxu1 %v3615_v14  ;;  %v2471_v14 = vpop.permute.xlu1 %2470 }
 0x155   : > { %1426 = vmatmul.mubr.bf16.gmra.mxu0 %v3617_v15 }
 0x156   : > { %1435 = vmatprep.mubr.bf16.mxu0 %v3619_v17 }
 0x157   : > { %2259 = vmatmul.mubr.bf16.gmra.mxu1 %v3618_v16 }
 0x158   : > { %2268 = vmatprep.mubr.bf16.mxu1 %v3621_v18 }
 0x15d   : > { %1436 = vmatmul.mubr.bf16.gmra.mxu0 %v3623_v19 }
 0x15e   : > { %1445 = vmatprep.mubr.bf16.mxu0 %v3625_v21 }
 0x15f   : > { %2269 = vmatmul.mubr.bf16.gmra.mxu1 %v3624_v20 }
 0x160   : > { %2278 = vmatprep.mubr.bf16.mxu1 %v3627_v22 }
 0x165   : > { %1446 = vmatmul.mubr.bf16.gmra.mxu0 %v3629_v23  ;;  %v2476_v23 = vpop.permute.xlu0 %2475 }
 0x166   : > { %1455 = vmatprep.mubr.bf16.mxu0 %v3631_v25 }
 0x167   : > { %2279 = vmatmul.mubr.bf16.gmra.mxu1 %v3630_v24 }
 0x168   : > { %2288 = vmatprep.mubr.bf16.mxu1 %v3633_v26 }
 0x16d   : > { %1456 = vmatmul.mubr.bf16.gmra.mxu0 %v3635_v27 }
 0x16e   : > { %1465 = vmatprep.mubr.bf16.mxu0 %v3637_v29 }
 0x16f   : > { %2289 = vmatmul.mubr.bf16.gmra.mxu1 %v3636_v28  ;;  %v3665_v28 = vld [vmem:[%s4127_s16 + $0x1b0] ss:$8 sps:$4 sm:$0xff]  }
 0x170   : > { %2298 = vmatprep.mubr.bf16.mxu1 %v3639_v30  ;;  %v3666_v30 = vld [vmem:[%s4152_s20 + $0x1b0] ss:$8 sps:$4 sm:$0xff]  }
 0x175   : > { %1466 = vmatmul.mubr.bf16.gmra.mxu0 %v3641_v31  ;;  %v3669_v31 = vld [vmem:[%s4127_s16 + $0x1c4] ss:$8 sps:$4 sm:$0xff]  }
 0x176   : > { %1475 = vmatprep.mubr.bf16.mxu0 %v3643_v33 }
 0x177   : > { %2299 = vmatmul.mubr.bf16.gmra.mxu1 %v3642_v32 }
 0x178   : > { %2308 = vmatprep.mubr.bf16.mxu1 %v3645_v34 }
 0x17d   : > { %v1237_v40 = vpop.f32.mrf.mxu0  ;;  %1476 = vmatmul.mubr.bf16.gmra.mxu0 %v3647_v35  ;;  %v3672_v35 = vld [vmem:[%s4152_s20 + $0x1c4] ss:$8 sps:$4 sm:$0xff]  }
 0x17e   : > { %1485 = vmatprep.mubr.bf16.mxu0 %v3649_v37 }
 0x17f   : > { %v2070_v41 = vpop.f32.mrf.mxu1  ;;  %2309 = vmatmul.mubr.bf16.gmra.mxu1 %v3648_v36  ;;  %v1239_v43 = vpop.f32.mrf.mxu0 }
 0x180   : > { %v2071_v42 = vadd.f32 %v2070_v41, %v1237_v40  ;;  %2318 = vmatprep.mubr.bf16.mxu1 %v3651_v38  ;;  %v2481_v36 = vpop.permute.xlu1 %2480 }
 0x181   : > { %v2072_v44 = vpop.f32.mrf.mxu1  ;;  %v1241_v47 = vpop.f32.mrf.mxu0 }
 0x182   : > { %v2773_v45 = vadd.f32 %v2456_v39, %v2071_v42  ;;  %v2073_v46 = vadd.f32 %v2072_v44, %v1239_v43 }
 0x183   : > { %v2074_v49 = vpop.f32.mrf.mxu1  ;;  %v1243_v55 = vpop.f32.mrf.mxu0 }
 0x184   : > { %2901 = vst [vmem:[%s4331_s0] sm:$0xff] %v2773_v45  ;;  %v2774_v53 = vadd.f32 %v2456_v39, %v2073_v46  ;;  %v2075_v54 = vadd.f32 %v2074_v49, %v1241_v47  ;;  %v2486_v45 = vpop.permute.xlu0 %2485 }
 0x185   : > { %v2076_v57 = vpop.f32.mrf.mxu1  ;;  %v1247_v60 = vpop.f32.mrf.mxu0  ;;  %1486 = vmatmul.mubr.bf16.gmra.mxu0 %v3653_v48 }
 0x186   : > { %2902 = vst [vmem:[%s4331_s0 + $0x8] sm:$0xff] %v2774_v53  ;;  %v2775_v58 = vadd.f32 %v2461_v50, %v2075_v54  ;;  %v2077_v59 = vadd.f32 %v2076_v57, %v1243_v55  ;;  %1495 = vmatprep.mubr.bf16.mxu0 %v3655_v52  ;;  %v3670_v52 = vld [vmem:[%s4152_s20 + $0x1c0] ss:$8 sps:$4 sm:$0xff]   ;;  %v3675_v53 = vld [vmem:[%s4127_s16 + $0x1d4] ss:$8 sps:$4 sm:$0xff]  }
 0x187   : > { %v2080_v62 = vpop.f32.mrf.mxu1  ;;  %2319 = vmatmul.mubr.bf16.gmra.mxu1 %v3654_v51  ;;  %v1249_v1 = vpop.f32.mrf.mxu0  ;;  %v3678_v57 = vld [vmem:[%s4152_s20 + $0x1d4] ss:$8 sps:$4 sm:$0xff]  }
 0x188   : > { %2903 = vst [vmem:[%s4331_s0 + $0x10] sm:$0xff] %v2775_v58  ;;  %v2776_v63 = vadd.f32 %v2461_v50, %v2077_v59  ;;  %v2081_v0 = vadd.f32 %v2080_v62, %v1247_v60  ;;  %2328 = vmatprep.mubr.bf16.mxu1 %v3657_v56  ;;  %v3667_v50 = vld [vmem:[%s4127_s16 + $0x1c0] ss:$8 sps:$4 sm:$0xff]   ;;  %v2491_v58 = vpop.permute.xlu1 %2490 }
 0x189   : > { %v2082_v2 = vpop.f32.mrf.mxu1  ;;  %v1251_v5 = vpop.f32.mrf.mxu0 }
 0x18a   : > { %2904 = vst [vmem:[%s4331_s0 + $0x18] sm:$0xff] %v2776_v63  ;;  %v2777_v3 = vadd.f32 %v2466_v61, %v2081_v0  ;;  %v2083_v4 = vadd.f32 %v2082_v2, %v1249_v1 }
 0x18b   : > { %v2084_v7 = vpop.f32.mrf.mxu1  ;;  %v1253_v12 = vpop.f32.mrf.mxu0 }
 0x18c   : > { %2905 = vst [vmem:[%s4331_s0 + $0x20] sm:$0xff] %v2777_v3  ;;  %v2778_v10 = vadd.f32 %v2466_v61, %v2083_v4  ;;  %v2085_v11 = vadd.f32 %v2084_v7, %v1251_v5  ;;  %v2496_v3 = vpop.permute.xlu0 %2495 }
 0x18d   : > { %v2086_v15 = vpop.f32.mrf.mxu1  ;;  %v1257_v18 = vpop.f32.mrf.mxu0  ;;  %1496 = vmatmul.mubr.bf16.gmra.mxu0 %v3659_v6 }
 0x18e   : > { %2906 = vst [vmem:[%s4331_s0 + $0x28] sm:$0xff] %v2778_v10  ;;  %v2779_v16 = vadd.f32 %v2471_v14, %v2085_v11  ;;  %v2087_v17 = vadd.f32 %v2086_v15, %v1253_v12  ;;  %1505 = vmatprep.mubr.bf16.mxu0 %v3661_v9  ;;  %v3676_v10 = vld [vmem:[%s4152_s20 + $0x1d0] ss:$8 sps:$4 sm:$0xff]   ;;  %v3681_v11 = vld [vmem:[%s4127_s16 + $0x1e4] ss:$8 sps:$4 sm:$0xff]  }
 0x18f   : > { %v2090_v19 = vpop.f32.mrf.mxu1  ;;  %2329 = vmatmul.mubr.bf16.gmra.mxu1 %v3660_v8  ;;  %v1259_v22 = vpop.f32.mrf.mxu0  ;;  %v3673_v8 = vld [vmem:[%s4127_s16 + $0x1d0] ss:$8 sps:$4 sm:$0xff]   ;;  %v3684_v15 = vld [vmem:[%s4152_s20 + $0x1e4] ss:$8 sps:$4 sm:$0xff]  }
 0x190   : > { %2907 = vst [vmem:[%s4331_s0 + $0x30] sm:$0xff] %v2779_v16  ;;  %v2780_v20 = vadd.f32 %v2471_v14, %v2087_v17  ;;  %v2091_v21 = vadd.f32 %v2090_v19, %v1257_v18  ;;  %2338 = vmatprep.mubr.bf16.mxu1 %v3663_v13  ;;  %v2501_v16 = vpop.permute.xlu1 %2500 }
 0x191   : > { %v2092_v24 = vpop.f32.mrf.mxu1  ;;  %v1261_v27 = vpop.f32.mrf.mxu0 }
 0x192   : > { %2908 = vst [vmem:[%s4331_s0 + $0x38] sm:$0xff] %v2780_v20  ;;  %v2781_v25 = vadd.f32 %v2476_v23, %v2091_v21  ;;  %v2093_v26 = vadd.f32 %v2092_v24, %v1259_v22 }
 0x193   : > { %v2094_v29 = vpop.f32.mrf.mxu1  ;;  %v1263_v34 = vpop.f32.mrf.mxu0 }
 0x194   : > { %2909 = vst [vmem:[%s4331_s0 + $0x40] sm:$0xff] %v2781_v25  ;;  %v2782_v32 = vadd.f32 %v2476_v23, %v2093_v26  ;;  %v2095_v33 = vadd.f32 %v2094_v29, %v1261_v27  ;;  %v2506_v25 = vpop.permute.xlu0 %2505 }
 0x195   : > { %v2096_v37 = vpop.f32.mrf.mxu1  ;;  %v1267_v40 = vpop.f32.mrf.mxu0  ;;  %1506 = vmatmul.mubr.bf16.gmra.mxu0 %v3665_v28 }
 0x196   : > { %2910 = vst [vmem:[%s4331_s0 + $0x48] sm:$0xff] %v2782_v32  ;;  %v2783_v38 = vadd.f32 %v2481_v36, %v2095_v33  ;;  %v2097_v39 = vadd.f32 %v2096_v37, %v1263_v34  ;;  %1515 = vmatprep.mubr.bf16.mxu0 %v3669_v31  ;;  %v3682_v32 = vld [vmem:[%s4152_s20 + $0x1e0] ss:$8 sps:$4 sm:$0xff]   ;;  %v3687_v33 = vld [vmem:[%s4127_s16 + $0x1f4] ss:$8 sps:$4 sm:$0xff]  }
 0x197   : > { %v2100_v41 = vpop.f32.mrf.mxu1  ;;  %2339 = vmatmul.mubr.bf16.gmra.mxu1 %v3666_v30  ;;  %v1269_v44 = vpop.f32.mrf.mxu0  ;;  %v3679_v30 = vld [vmem:[%s4127_s16 + $0x1e0] ss:$8 sps:$4 sm:$0xff]   ;;  %v3690_v37 = vld [vmem:[%s4152_s20 + $0x1f4] ss:$8 sps:$4 sm:$0xff]  }
 0x198   : > { %2911 = vst [vmem:[%s4331_s0 + $0x50] sm:$0xff] %v2783_v38  ;;  %v2784_v42 = vadd.f32 %v2481_v36, %v2097_v39  ;;  %v2101_v43 = vadd.f32 %v2100_v41, %v1267_v40  ;;  %2348 = vmatprep.mubr.bf16.mxu1 %v3672_v35  ;;  %v2511_v38 = vpop.permute.xlu1 %2510 }
 0x199   : > { %v2102_v46 = vpop.f32.mrf.mxu1  ;;  %v1271_v49 = vpop.f32.mrf.mxu0 }
 0x19a   : > { %2912 = vst [vmem:[%s4331_s0 + $0x58] sm:$0xff] %v2784_v42  ;;  %v2785_v47 = vadd.f32 %v2486_v45, %v2101_v43  ;;  %v2103_v48 = vadd.f32 %v2102_v46, %v1269_v44 }
 0x19b   : > { %v2104_v51 = vpop.f32.mrf.mxu1  ;;  %v1273_v56 = vpop.f32.mrf.mxu0 }
 0x19c   : > { %2913 = vst [vmem:[%s4331_s0 + $0x60] sm:$0xff] %v2785_v47  ;;  %v2786_v54 = vadd.f32 %v2486_v45, %v2103_v48  ;;  %v2105_v55 = vadd.f32 %v2104_v51, %v1271_v49  ;;  %v2516_v47 = vpop.permute.xlu0 %2515 }
 0x19d   : > { %v2106_v59 = vpop.f32.mrf.mxu1  ;;  %v1277_v62 = vpop.f32.mrf.mxu0  ;;  %1516 = vmatmul.mubr.bf16.gmra.mxu0 %v3667_v50 }
 0x19e   : > { %2914 = vst [vmem:[%s4331_s0 + $0x68] sm:$0xff] %v2786_v54  ;;  %v2787_v60 = vadd.f32 %v2491_v58, %v2105_v55  ;;  %v2107_v61 = vadd.f32 %v2106_v59, %v1273_v56  ;;  %1525 = vmatprep.mubr.bf16.mxu0 %v3675_v53  ;;  %v3688_v54 = vld [vmem:[%s4152_s20 + $0x1f0] ss:$8 sps:$4 sm:$0xff]   ;;  %s3829_s20 = scalar_lea.vmem %s3828_s17, 32768 }
 0x19f   : > { %v2110_v63 = vpop.f32.mrf.mxu1  ;;  %2349 = vmatmul.mubr.bf16.gmra.mxu1 %v3670_v52  ;;  %v1279_v2 = vpop.f32.mrf.mxu0  ;;  %v3685_v52 = vld [vmem:[%s4127_s16 + $0x1f0] ss:$8 sps:$4 sm:$0xff]   ;;  %p3831_p6 = scmp.lt.s32.totalorder %s3829_s20, %s3823_s21 }
 0x1a0   : > { %2915 = vst [vmem:[%s4331_s0 + $0x70] sm:$0xff] %v2787_v60  ;;  %v2788_v0 = vadd.f32 %v2491_v58, %v2107_v61  ;;  %v2111_v1 = vadd.f32 %v2110_v63, %v1277_v62  ;;  %2358 = vmatprep.mubr.bf16.mxu1 %v3678_v57  ;;  %v2521_v58 = vpop.permute.xlu1 %2520 }
 0x1a1   : > { %v2112_v4 = vpop.f32.mrf.mxu1  ;;  %v1281_v7 = vpop.f32.mrf.mxu0  ;;  %p3832_p3 = por %p3831_p6, %p3830_p5 }
 0x1a2   : > { %2916 = vst [vmem:[%s4331_s0 + $0x78] sm:$0xff] %v2788_v0  ;;  %v2789_v5 = vadd.f32 %v2496_v3, %v2111_v1  ;;  %v2113_v6 = vadd.f32 %v2112_v4, %v1279_v2 }
 0x1a3   : > { %v2114_v9 = vpop.f32.mrf.mxu1  ;;  %v1283_v14 = vpop.f32.mrf.mxu0  ;;  %p3833_p10 = pnand %p3832_p3, %p3826_p11 }
 0x1a4   : > { %2917 = vst [vmem:[%s4331_s0 + $0x80] sm:$0xff] %v2789_v5  ;;  %v2790_v12 = vadd.f32 %v2496_v3, %v2113_v6  ;;  %v2115_v13 = vadd.f32 %v2114_v9, %v1281_v7  ;;  %v2526_v3 = vpop.permute.xlu0 %2525 }
 0x1a5   : > { %v2116_v17 = vpop.f32.mrf.mxu1  ;;  %v1287_v20 = vpop.f32.mrf.mxu0  ;;  %1526 = vmatmul.mubr.bf16.gmra.mxu0 %v3673_v8 }
 0x1a6   : > { %2918 = vst [vmem:[%s4331_s0 + $0x88] sm:$0xff] %v2790_v12  ;;  %v2791_v18 = vadd.f32 %v2501_v16, %v2115_v13  ;;  %v2117_v19 = vadd.f32 %v2116_v17, %v1283_v14  ;;  %1535 = vmatprep.mubr.bf16.mxu0 %v3681_v11  ;;  %v2531_v12 = vpop.permute.xlu1 %2530 }
 0x1a7   : > { %v2120_v21 = vpop.f32.mrf.mxu1  ;;  %2359 = vmatmul.mubr.bf16.gmra.mxu1 %v3676_v10  ;;  %v1289_v24 = vpop.f32.mrf.mxu0 }
 0x1a8   : > { %2919 = vst [vmem:[%s4331_s0 + $0x90] sm:$0xff] %v2791_v18  ;;  %v2792_v22 = vadd.f32 %v2501_v16, %v2117_v19  ;;  %v2121_v23 = vadd.f32 %v2120_v21, %v1287_v20  ;;  %2368 = vmatprep.mubr.bf16.mxu1 %v3684_v15  ;;  %v2536_v21 = vpop.permute.xlu0 %2535 }
 0x1a9   : > { %v2122_v26 = vpop.f32.mrf.mxu1  ;;  %v1291_v29 = vpop.f32.mrf.mxu0 }
 0x1aa   : > { %2920 = vst [vmem:[%s4331_s0 + $0x98] sm:$0xff] %v2792_v22  ;;  %v2793_v27 = vadd.f32 %v2506_v25, %v2121_v23  ;;  %v2123_v28 = vadd.f32 %v2122_v26, %v1289_v24 }
 0x1ab   : > { %v2124_v31 = vpop.f32.mrf.mxu1  ;;  %v1293_v36 = vpop.f32.mrf.mxu0 }
 0x1ac   : > { %2921 = vst [vmem:[%s4331_s0 + $0xa0] sm:$0xff] %v2793_v27  ;;  %v2794_v34 = vadd.f32 %v2506_v25, %v2123_v28  ;;  %v2125_v35 = vadd.f32 %v2124_v31, %v1291_v29 }
 0x1ad   : > { %v2126_v39 = vpop.f32.mrf.mxu1  ;;  %v1297_v42 = vpop.f32.mrf.mxu0  ;;  %1536 = vmatmul.mubr.bf16.gmra.mxu0 %v3679_v30 }
 0x1ae   : > { %2922 = vst [vmem:[%s4331_s0 + $0xa8] sm:$0xff] %v2794_v34  ;;  %v2795_v40 = vadd.f32 %v2511_v38, %v2125_v35  ;;  %v2127_v41 = vadd.f32 %v2126_v39, %v1293_v36  ;;  %1545 = vmatprep.mubr.bf16.mxu0 %v3687_v33  ;;  %v2541_v30 = vpop.permute.xlu1 %2540  ;;  %v2546_v39 = vpop.permute.xlu0 %2545 }
 0x1af   : > { %v2130_v43 = vpop.f32.mrf.mxu1  ;;  %2369 = vmatmul.mubr.bf16.gmra.mxu1 %v3682_v32  ;;  %v1299_v46 = vpop.f32.mrf.mxu0 }
 0x1b0   : > { %2923 = vst [vmem:[%s4331_s0 + $0xb0] sm:$0xff] %v2795_v40  ;;  %v2796_v44 = vadd.f32 %v2511_v38, %v2127_v41  ;;  %v2131_v45 = vadd.f32 %v2130_v43, %v1297_v42  ;;  %2378 = vmatprep.mubr.bf16.mxu1 %v3690_v37 }
 0x1b1   : > { %v2132_v48 = vpop.f32.mrf.mxu1  ;;  %v1301_v51 = vpop.f32.mrf.mxu0 }
 0x1b2   : > { %2924 = vst [vmem:[%s4331_s0 + $0xb8] sm:$0xff] %v2796_v44  ;;  %v2797_v49 = vadd.f32 %v2516_v47, %v2131_v45  ;;  %v2133_v50 = vadd.f32 %v2132_v48, %v1299_v46  ;;  %v2551_v48 = vpop.permute.xlu1 %2550 }
 0x1b3   : > { %v2134_v53 = vpop.f32.mrf.mxu1  ;;  %v1303_v57 = vpop.f32.mrf.mxu0 }
 0x1b4   : > { %2925 = vst [vmem:[%s4331_s0 + $0xc0] sm:$0xff] %v2797_v49  ;;  %v2798_v55 = vadd.f32 %v2516_v47, %v2133_v50  ;;  %v2135_v56 = vadd.f32 %v2134_v53, %v1301_v51 }
 0x1b5   : > { %v2136_v59 = vpop.f32.mrf.mxu1  ;;  %v1307_v62 = vpop.f32.mrf.mxu0  ;;  %1546 = vmatmul.mubr.bf16.gmra.mxu0 %v3685_v52 }
 0x1b6   : > { %2926 = vst [vmem:[%s4331_s0 + $0xc8] sm:$0xff] %v2798_v55  ;;  %v2799_v60 = vadd.f32 %v2521_v58, %v2135_v56  ;;  %v2137_v61 = vadd.f32 %v2136_v59, %v1303_v57  ;;  %v2556_v57 = vpop.permute.xlu0 %2555 }
 0x1b7   : > { %v2140_v63 = vpop.f32.mrf.mxu1  ;;  %2379 = vmatmul.mubr.bf16.gmra.mxu1 %v3688_v54  ;;  %v1309_v2 = vpop.f32.mrf.mxu0 }
 0x1b8   : > { %2927 = vst [vmem:[%s4331_s0 + $0xd0] sm:$0xff] %v2799_v60  ;;  %v2800_v0 = vadd.f32 %v2521_v58, %v2137_v61  ;;  %v2141_v1 = vadd.f32 %v2140_v63, %v1307_v62 }
 0x1b9   : > { %v2142_v4 = vpop.f32.mrf.mxu1  ;;  %v1311_v7 = vpop.f32.mrf.mxu0 }
 0x1ba   : > { %2928 = vst [vmem:[%s4331_s0 + $0xd8] sm:$0xff] %v2800_v0  ;;  %v2801_v5 = vadd.f32 %v2526_v3, %v2141_v1  ;;  %v2143_v6 = vadd.f32 %v2142_v4, %v1309_v2  ;;  %v2561_v2 = vpop.permute.xlu1 %2560 }
 0x1bb   : > { %v2144_v8 = vpop.f32.mrf.mxu1  ;;  %v1313_v11 = vpop.f32.mrf.mxu0 }
 0x1bc   : > { %2929 = vst [vmem:[%s4331_s0 + $0xe0] sm:$0xff] %v2801_v5  ;;  %v2802_v9 = vadd.f32 %v2526_v3, %v2143_v6  ;;  %v2145_v10 = vadd.f32 %v2144_v8, %v1311_v7 }
 0x1bd   : > { %v2146_v13 = vpop.f32.mrf.mxu1  ;;  %v1317_v16 = vpop.f32.mrf.mxu0 }
 0x1be   : > { %2930 = vst [vmem:[%s4331_s0 + $0xe8] sm:$0xff] %v2802_v9  ;;  %v2803_v14 = vadd.f32 %v2531_v12, %v2145_v10  ;;  %v2147_v15 = vadd.f32 %v2146_v13, %v1313_v11  ;;  %v2566_v11 = vpop.permute.xlu0 %2565 }
 0x1bf   : > { %v2150_v17 = vpop.f32.mrf.mxu1  ;;  %v1319_v20 = vpop.f32.mrf.mxu0 }
 0x1c0   : > { %2931 = vst [vmem:[%s4331_s0 + $0xf0] sm:$0xff] %v2803_v14  ;;  %v2804_v18 = vadd.f32 %v2531_v12, %v2147_v15  ;;  %v2151_v19 = vadd.f32 %v2150_v17, %v1317_v16 }
 0x1c1   : > { %v2152_v22 = vpop.f32.mrf.mxu1  ;;  %v1321_v25 = vpop.f32.mrf.mxu0 }
 0x1c2   : > { %2932 = vst [vmem:[%s4331_s0 + $0xf8] sm:$0xff] %v2804_v18  ;;  %v2805_v23 = vadd.f32 %v2536_v21, %v2151_v19  ;;  %v2153_v24 = vadd.f32 %v2152_v22, %v1319_v20  ;;  %v2571_v20 = vpop.permute.xlu1 %2570 }
 0x1c3   : > { %v2154_v26 = vpop.f32.mrf.mxu1  ;;  %v1323_v29 = vpop.f32.mrf.mxu0 }
 0x1c4   : > { %2933 = vst [vmem:[%s4331_s0 + $0x100] sm:$0xff] %v2805_v23  ;;  %v2806_v27 = vadd.f32 %v2536_v21, %v2153_v24  ;;  %v2155_v28 = vadd.f32 %v2154_v26, %v1321_v25 }
 0x1c5   : > { %v2156_v31 = vpop.f32.mrf.mxu1  ;;  %v1327_v34 = vpop.f32.mrf.mxu0 }
 0x1c6   : > { %2934 = vst [vmem:[%s4331_s0 + $0x108] sm:$0xff] %v2806_v27  ;;  %v2807_v32 = vadd.f32 %v2541_v30, %v2155_v28  ;;  %v2157_v33 = vadd.f32 %v2156_v31, %v1323_v29  ;;  %v2576_v29 = vpop.permute.xlu0 %2575 }
 0x1c7   : > { %v2160_v35 = vpop.f32.mrf.mxu1  ;;  %v1329_v38 = vpop.f32.mrf.mxu0 }
 0x1c8   : > { %2935 = vst [vmem:[%s4331_s0 + $0x110] sm:$0xff] %v2807_v32  ;;  %v2808_v36 = vadd.f32 %v2541_v30, %v2157_v33  ;;  %v2161_v37 = vadd.f32 %v2160_v35, %v1327_v34 }
 0x1c9   : > { %v2162_v40 = vpop.f32.mrf.mxu1  ;;  %v1331_v43 = vpop.f32.mrf.mxu0 }
 0x1ca   : > { %2936 = vst [vmem:[%s4331_s0 + $0x118] sm:$0xff] %v2808_v36  ;;  %v2809_v41 = vadd.f32 %v2546_v39, %v2161_v37  ;;  %v2163_v42 = vadd.f32 %v2162_v40, %v1329_v38  ;;  %v2581_v38 = vpop.permute.xlu1 %2580 }
 0x1cb   : > { %v2164_v44 = vpop.f32.mrf.mxu1  ;;  %v1333_v47 = vpop.f32.mrf.mxu0 }
 0x1cc   : > { %2937 = vst [vmem:[%s4331_s0 + $0x120] sm:$0xff] %v2809_v41  ;;  %v2810_v45 = vadd.f32 %v2546_v39, %v2163_v42  ;;  %v2165_v46 = vadd.f32 %v2164_v44, %v1331_v43 }
 0x1cd   : > { %v2166_v49 = vpop.f32.mrf.mxu1  ;;  %v1337_v52 = vpop.f32.mrf.mxu0 }
 0x1ce   : > { %2938 = vst [vmem:[%s4331_s0 + $0x128] sm:$0xff] %v2810_v45  ;;  %v2811_v50 = vadd.f32 %v2551_v48, %v2165_v46  ;;  %v2167_v51 = vadd.f32 %v2166_v49, %v1333_v47  ;;  %v2586_v47 = vpop.permute.xlu0 %2585 }
 0x1cf   : > { %v2170_v53 = vpop.f32.mrf.mxu1  ;;  %v1339_v56 = vpop.f32.mrf.mxu0 }
 0x1d0   : > { %2939 = vst [vmem:[%s4331_s0 + $0x130] sm:$0xff] %v2811_v50  ;;  %v2812_v54 = vadd.f32 %v2551_v48, %v2167_v51  ;;  %v2171_v55 = vadd.f32 %v2170_v53, %v1337_v52 }
 0x1d1   : > { %v2172_v58 = vpop.f32.mrf.mxu1  ;;  %v1341_v61 = vpop.f32.mrf.mxu0 }
 0x1d2   : > { %2940 = vst [vmem:[%s4331_s0 + $0x138] sm:$0xff] %v2812_v54  ;;  %v2813_v59 = vadd.f32 %v2556_v57, %v2171_v55  ;;  %v2173_v60 = vadd.f32 %v2172_v58, %v1339_v56  ;;  %v2591_v56 = vpop.permute.xlu1 %2590 }
 0x1d3   : > { %v2174_v62 = vpop.f32.mrf.mxu1  ;;  %v1343_v1 = vpop.f32.mrf.mxu0 }
 0x1d4   : > { %2941 = vst [vmem:[%s4331_s0 + $0x140] sm:$0xff] %v2813_v59  ;;  %v2814_v63 = vadd.f32 %v2556_v57, %v2173_v60  ;;  %v2175_v0 = vadd.f32 %v2174_v62, %v1341_v61 }
 0x1d5   : > { %v2176_v3 = vpop.f32.mrf.mxu1  ;;  %v1347_v6 = vpop.f32.mrf.mxu0 }
 0x1d6   : > { %2942 = vst [vmem:[%s4331_s0 + $0x148] sm:$0xff] %v2814_v63  ;;  %v2815_v4 = vadd.f32 %v2561_v2, %v2175_v0  ;;  %v2177_v5 = vadd.f32 %v2176_v3, %v1343_v1  ;;  %v2596_v1 = vpop.permute.xlu0 %2595 }
 0x1d7   : > { %v2180_v7 = vpop.f32.mrf.mxu1  ;;  %v1349_v10 = vpop.f32.mrf.mxu0 }
 0x1d8   : > { %2943 = vst [vmem:[%s4331_s0 + $0x150] sm:$0xff] %v2815_v4  ;;  %v2816_v8 = vadd.f32 %v2561_v2, %v2177_v5  ;;  %v2181_v9 = vadd.f32 %v2180_v7, %v1347_v6 }
 0x1d9   : > { %v2182_v12 = vpop.f32.mrf.mxu1  ;;  %v1351_v15 = vpop.f32.mrf.mxu0 }
 0x1da   : > { %2944 = vst [vmem:[%s4331_s0 + $0x158] sm:$0xff] %v2816_v8  ;;  %v2817_v13 = vadd.f32 %v2566_v11, %v2181_v9  ;;  %v2183_v14 = vadd.f32 %v2182_v12, %v1349_v10  ;;  %v2601_v10 = vpop.permute.xlu1 %2600 }
 0x1db   : > { %v2184_v16 = vpop.f32.mrf.mxu1  ;;  %v1353_v19 = vpop.f32.mrf.mxu0 }
 0x1dc   : > { %2945 = vst [vmem:[%s4331_s0 + $0x160] sm:$0xff] %v2817_v13  ;;  %v2818_v17 = vadd.f32 %v2566_v11, %v2183_v14  ;;  %v2185_v18 = vadd.f32 %v2184_v16, %v1351_v15 }
 0x1dd   : > { %v2186_v21 = vpop.f32.mrf.mxu1  ;;  %v1357_v24 = vpop.f32.mrf.mxu0 }
 0x1de   : > { %2946 = vst [vmem:[%s4331_s0 + $0x168] sm:$0xff] %v2818_v17  ;;  %v2819_v22 = vadd.f32 %v2571_v20, %v2185_v18  ;;  %v2187_v23 = vadd.f32 %v2186_v21, %v1353_v19  ;;  %v2606_v19 = vpop.permute.xlu0 %2605 }
 0x1df   : > { %v2190_v25 = vpop.f32.mrf.mxu1  ;;  %v1359_v28 = vpop.f32.mrf.mxu0 }
 0x1e0   : > { %2947 = vst [vmem:[%s4331_s0 + $0x170] sm:$0xff] %v2819_v22  ;;  %v2820_v26 = vadd.f32 %v2571_v20, %v2187_v23  ;;  %v2191_v27 = vadd.f32 %v2190_v25, %v1357_v24 }
 0x1e1   : > { %v2192_v30 = vpop.f32.mrf.mxu1  ;;  %v1361_v33 = vpop.f32.mrf.mxu0 }
 0x1e2   : > { %2948 = vst [vmem:[%s4331_s0 + $0x178] sm:$0xff] %v2820_v26  ;;  %v2821_v31 = vadd.f32 %v2576_v29, %v2191_v27  ;;  %v2193_v32 = vadd.f32 %v2192_v30, %v1359_v28  ;;  %v2611_v28 = vpop.permute.xlu1 %2610 }
 0x1e3   : > { %v2194_v34 = vpop.f32.mrf.mxu1  ;;  %v1363_v37 = vpop.f32.mrf.mxu0 }
 0x1e4   : > { %2949 = vst [vmem:[%s4331_s0 + $0x180] sm:$0xff] %v2821_v31  ;;  %v2822_v35 = vadd.f32 %v2576_v29, %v2193_v32  ;;  %v2195_v36 = vadd.f32 %v2194_v34, %v1361_v33 }
 0x1e5   : > { %v2196_v39 = vpop.f32.mrf.mxu1  ;;  %v1367_v42 = vpop.f32.mrf.mxu0 }
 0x1e6   : > { %2950 = vst [vmem:[%s4331_s0 + $0x188] sm:$0xff] %v2822_v35  ;;  %v2823_v40 = vadd.f32 %v2581_v38, %v2195_v36  ;;  %v2197_v41 = vadd.f32 %v2196_v39, %v1363_v37  ;;  %v2616_v37 = vpop.permute.xlu0 %2615 }
 0x1e7   : > { %v2200_v43 = vpop.f32.mrf.mxu1  ;;  %v1369_v46 = vpop.f32.mrf.mxu0 }
 0x1e8   : > { %2951 = vst [vmem:[%s4331_s0 + $0x190] sm:$0xff] %v2823_v40  ;;  %v2824_v44 = vadd.f32 %v2581_v38, %v2197_v41  ;;  %v2201_v45 = vadd.f32 %v2200_v43, %v1367_v42 }
 0x1e9   : > { %v2202_v48 = vpop.f32.mrf.mxu1  ;;  %v1371_v51 = vpop.f32.mrf.mxu0 }
 0x1ea   : > { %2952 = vst [vmem:[%s4331_s0 + $0x198] sm:$0xff] %v2824_v44  ;;  %v2825_v49 = vadd.f32 %v2586_v47, %v2201_v45  ;;  %v2203_v50 = vadd.f32 %v2202_v48, %v1369_v46  ;;  %v2621_v46 = vpop.permute.xlu1 %2620 }
 0x1eb   : > { %v2204_v52 = vpop.f32.mrf.mxu1  ;;  %v1373_v55 = vpop.f32.mrf.mxu0 }
 0x1ec   : > { %2953 = vst [vmem:[%s4331_s0 + $0x1a0] sm:$0xff] %v2825_v49  ;;  %v2826_v53 = vadd.f32 %v2586_v47, %v2203_v50  ;;  %v2205_v54 = vadd.f32 %v2204_v52, %v1371_v51 }
 0x1ed   : > { %v2206_v57 = vpop.f32.mrf.mxu1  ;;  %v1377_v60 = vpop.f32.mrf.mxu0 }
 0x1ee   : > { %2954 = vst [vmem:[%s4331_s0 + $0x1a8] sm:$0xff] %v2826_v53  ;;  %v2827_v58 = vadd.f32 %v2591_v56, %v2205_v54  ;;  %v2207_v59 = vadd.f32 %v2206_v57, %v1373_v55  ;;  %v2626_v55 = vpop.permute.xlu0 %2625 }
 0x1ef   : > { %v2210_v61 = vpop.f32.mrf.mxu1  ;;  %v1379_v0 = vpop.f32.mrf.mxu0 }
 0x1f0   : > { %2955 = vst [vmem:[%s4331_s0 + $0x1b0] sm:$0xff] %v2827_v58  ;;  %v2828_v62 = vadd.f32 %v2591_v56, %v2207_v59  ;;  %v2211_v63 = vadd.f32 %v2210_v61, %v1377_v60 }
 0x1f1   : > { %v2212_v2 = vpop.f32.mrf.mxu1  ;;  %v1381_v5 = vpop.f32.mrf.mxu0 }
 0x1f2   : > { %2956 = vst [vmem:[%s4331_s0 + $0x1b8] sm:$0xff] %v2828_v62  ;;  %v2829_v3 = vadd.f32 %v2596_v1, %v2211_v63  ;;  %v2213_v4 = vadd.f32 %v2212_v2, %v1379_v0  ;;  %v2631_v0 = vpop.permute.xlu1 %2630 }
 0x1f3   : > { %v2214_v6 = vpop.f32.mrf.mxu1  ;;  %v1383_v9 = vpop.f32.mrf.mxu0 }
 0x1f4   : > { %2957 = vst [vmem:[%s4331_s0 + $0x1c0] sm:$0xff] %v2829_v3  ;;  %v2830_v7 = vadd.f32 %v2596_v1, %v2213_v4  ;;  %v2215_v8 = vadd.f32 %v2214_v6, %v1381_v5 }
 0x1f5   : > { %v2216_v11 = vpop.f32.mrf.mxu1  ;;  %v1387_v14 = vpop.f32.mrf.mxu0 }
 0x1f6   : > { %2958 = vst [vmem:[%s4331_s0 + $0x1c8] sm:$0xff] %v2830_v7  ;;  %v2831_v12 = vadd.f32 %v2601_v10, %v2215_v8  ;;  %v2217_v13 = vadd.f32 %v2216_v11, %v1383_v9  ;;  %v2636_v9 = vpop.permute.xlu0 %2635 }
 0x1f7   : > { %v2220_v15 = vpop.f32.mrf.mxu1  ;;  %v1389_v18 = vpop.f32.mrf.mxu0 }
 0x1f8   : > { %2959 = vst [vmem:[%s4331_s0 + $0x1d0] sm:$0xff] %v2831_v12  ;;  %v2832_v16 = vadd.f32 %v2601_v10, %v2217_v13  ;;  %v2221_v17 = vadd.f32 %v2220_v15, %v1387_v14 }
 0x1f9   : > { %v2222_v20 = vpop.f32.mrf.mxu1  ;;  %v1391_v23 = vpop.f32.mrf.mxu0 }
 0x1fa   : > { %2960 = vst [vmem:[%s4331_s0 + $0x1d8] sm:$0xff] %v2832_v16  ;;  %v2833_v21 = vadd.f32 %v2606_v19, %v2221_v17  ;;  %v2223_v22 = vadd.f32 %v2222_v20, %v1389_v18  ;;  %v2641_v18 = vpop.permute.xlu1 %2640 }
 0x1fb   : > { %v2224_v24 = vpop.f32.mrf.mxu1  ;;  %v1393_v27 = vpop.f32.mrf.mxu0 }
 0x1fc   : > { %2961 = vst [vmem:[%s4331_s0 + $0x1e0] sm:$0xff] %v2833_v21  ;;  %v2834_v25 = vadd.f32 %v2606_v19, %v2223_v22  ;;  %v2225_v26 = vadd.f32 %v2224_v24, %v1391_v23 }
 0x1fd   : > { %v2226_v29 = vpop.f32.mrf.mxu1  ;;  %v1397_v32 = vpop.f32.mrf.mxu0 }
 0x1fe   : > { %2962 = vst [vmem:[%s4331_s0 + $0x1e8] sm:$0xff] %v2834_v25  ;;  %v2835_v30 = vadd.f32 %v2611_v28, %v2225_v26  ;;  %v2227_v31 = vadd.f32 %v2226_v29, %v1393_v27  ;;  %v2646_v27 = vpop.permute.xlu0 %2645 }
 0x1ff   : > { %v2230_v33 = vpop.f32.mrf.mxu1  ;;  %v1399_v36 = vpop.f32.mrf.mxu0 }
 0x200   : > { %2963 = vst [vmem:[%s4331_s0 + $0x1f0] sm:$0xff] %v2835_v30  ;;  %v2836_v34 = vadd.f32 %v2611_v28, %v2227_v31  ;;  %v2231_v35 = vadd.f32 %v2230_v33, %v1397_v32 }
 0x201   : > { %v2232_v38 = vpop.f32.mrf.mxu1  ;;  %v1401_v41 = vpop.f32.mrf.mxu0 }
 0x202   : > { %2964 = vst [vmem:[%s4331_s0 + $0x1f8] sm:$0xff] %v2836_v34  ;;  %v2837_v39 = vadd.f32 %v2616_v37, %v2231_v35  ;;  %v2233_v40 = vadd.f32 %v2232_v38, %v1399_v36  ;;  %v2651_v36 = vpop.permute.xlu1 %2650 }
 0x203   : > { %v2234_v42 = vpop.f32.mrf.mxu1  ;;  %v1403_v45 = vpop.f32.mrf.mxu0 }
 0x204   : > { %2965 = vst [vmem:[%s4331_s0 + $0x200] sm:$0xff] %v2837_v39  ;;  %v2838_v43 = vadd.f32 %v2616_v37, %v2233_v40  ;;  %v2235_v44 = vadd.f32 %v2234_v42, %v1401_v41 }
 0x205   : > { %v2236_v47 = vpop.f32.mrf.mxu1  ;;  %v1407_v50 = vpop.f32.mrf.mxu0 }
 0x206   : > { %2966 = vst [vmem:[%s4331_s0 + $0x208] sm:$0xff] %v2838_v43  ;;  %v2839_v48 = vadd.f32 %v2621_v46, %v2235_v44  ;;  %v2237_v49 = vadd.f32 %v2236_v47, %v1403_v45  ;;  %v2656_v45 = vpop.permute.xlu0 %2655 }
 0x207   : > { %v2240_v51 = vpop.f32.mrf.mxu1  ;;  %v1409_v54 = vpop.f32.mrf.mxu0 }
 0x208   : > { %2967 = vst [vmem:[%s4331_s0 + $0x210] sm:$0xff] %v2839_v48  ;;  %v2840_v52 = vadd.f32 %v2621_v46, %v2237_v49  ;;  %v2241_v53 = vadd.f32 %v2240_v51, %v1407_v50 }
 0x209   : > { %v2242_v56 = vpop.f32.mrf.mxu1  ;;  %v1411_v59 = vpop.f32.mrf.mxu0 }
 0x20a   : > { %2968 = vst [vmem:[%s4331_s0 + $0x218] sm:$0xff] %v2840_v52  ;;  %v2841_v57 = vadd.f32 %v2626_v55, %v2241_v53  ;;  %v2243_v58 = vadd.f32 %v2242_v56, %v1409_v54  ;;  %v2661_v54 = vpop.permute.xlu1 %2660 }
 0x20b   : > { %v2244_v60 = vpop.f32.mrf.mxu1  ;;  %v1413_v63 = vpop.f32.mrf.mxu0 }
 0x20c   : > { %2969 = vst [vmem:[%s4331_s0 + $0x220] sm:$0xff] %v2841_v57  ;;  %v2842_v61 = vadd.f32 %v2626_v55, %v2243_v58  ;;  %v2245_v62 = vadd.f32 %v2244_v60, %v1411_v59 }
 0x20d   : > { %v2246_v1 = vpop.f32.mrf.mxu1  ;;  %v1417_v4 = vpop.f32.mrf.mxu0 }
 0x20e   : > { %2970 = vst [vmem:[%s4331_s0 + $0x228] sm:$0xff] %v2842_v61  ;;  %v2843_v2 = vadd.f32 %v2631_v0, %v2245_v62  ;;  %v2247_v3 = vadd.f32 %v2246_v1, %v1413_v63  ;;  %v2666_v63 = vpop.permute.xlu0 %2665 }
 0x20f   : > { %v2250_v5 = vpop.f32.mrf.mxu1  ;;  %v1419_v8 = vpop.f32.mrf.mxu0 }
 0x210   : > { %2971 = vst [vmem:[%s4331_s0 + $0x230] sm:$0xff] %v2843_v2  ;;  %v2844_v6 = vadd.f32 %v2631_v0, %v2247_v3  ;;  %v2251_v7 = vadd.f32 %v2250_v5, %v1417_v4 }
 0x211   : > { %v2252_v10 = vpop.f32.mrf.mxu1  ;;  %v1421_v13 = vpop.f32.mrf.mxu0 }
 0x212   : > { %2972 = vst [vmem:[%s4331_s0 + $0x238] sm:$0xff] %v2844_v6  ;;  %v2845_v11 = vadd.f32 %v2636_v9, %v2251_v7  ;;  %v2253_v12 = vadd.f32 %v2252_v10, %v1419_v8  ;;  %v2671_v8 = vpop.permute.xlu1 %2670 }
 0x213   : > { %v2254_v14 = vpop.f32.mrf.mxu1  ;;  %v1423_v17 = vpop.f32.mrf.mxu0 }
 0x214   : > { %2973 = vst [vmem:[%s4331_s0 + $0x240] sm:$0xff] %v2845_v11  ;;  %v2846_v15 = vadd.f32 %v2636_v9, %v2253_v12  ;;  %v2255_v16 = vadd.f32 %v2254_v14, %v1421_v13 }
 0x215   : > { %v2256_v19 = vpop.f32.mrf.mxu1  ;;  %v1427_v22 = vpop.f32.mrf.mxu0 }
 0x216   : > { %2974 = vst [vmem:[%s4331_s0 + $0x248] sm:$0xff] %v2846_v15  ;;  %v2847_v20 = vadd.f32 %v2641_v18, %v2255_v16  ;;  %v2257_v21 = vadd.f32 %v2256_v19, %v1423_v17  ;;  %v2676_v17 = vpop.permute.xlu0 %2675 }
 0x217   : > { %v2260_v23 = vpop.f32.mrf.mxu1  ;;  %v1429_v26 = vpop.f32.mrf.mxu0 }
 0x218   : > { %2975 = vst [vmem:[%s4331_s0 + $0x250] sm:$0xff] %v2847_v20  ;;  %v2848_v24 = vadd.f32 %v2641_v18, %v2257_v21  ;;  %v2261_v25 = vadd.f32 %v2260_v23, %v1427_v22 }
 0x219   : > { %v2262_v28 = vpop.f32.mrf.mxu1  ;;  %v1431_v31 = vpop.f32.mrf.mxu0 }
 0x21a   : > { %2976 = vst [vmem:[%s4331_s0 + $0x258] sm:$0xff] %v2848_v24  ;;  %v2849_v29 = vadd.f32 %v2646_v27, %v2261_v25  ;;  %v2263_v30 = vadd.f32 %v2262_v28, %v1429_v26  ;;  %v2681_v26 = vpop.permute.xlu1 %2680 }
 0x21b   : > { %v2264_v32 = vpop.f32.mrf.mxu1  ;;  %v1433_v35 = vpop.f32.mrf.mxu0 }
 0x21c   : > { %2977 = vst [vmem:[%s4331_s0 + $0x260] sm:$0xff] %v2849_v29  ;;  %v2850_v33 = vadd.f32 %v2646_v27, %v2263_v30  ;;  %v2265_v34 = vadd.f32 %v2264_v32, %v1431_v31 }
 0x21d   : > { %v2266_v37 = vpop.f32.mrf.mxu1  ;;  %v1437_v40 = vpop.f32.mrf.mxu0 }
 0x21e   : > { %2978 = vst [vmem:[%s4331_s0 + $0x268] sm:$0xff] %v2850_v33  ;;  %v2851_v38 = vadd.f32 %v2651_v36, %v2265_v34  ;;  %v2267_v39 = vadd.f32 %v2266_v37, %v1433_v35  ;;  %v2686_v35 = vpop.permute.xlu0 %2685 }
 0x21f   : > { %v2270_v41 = vpop.f32.mrf.mxu1  ;;  %v1439_v44 = vpop.f32.mrf.mxu0 }
 0x220   : > { %2979 = vst [vmem:[%s4331_s0 + $0x270] sm:$0xff] %v2851_v38  ;;  %v2852_v42 = vadd.f32 %v2651_v36, %v2267_v39  ;;  %v2271_v43 = vadd.f32 %v2270_v41, %v1437_v40 }
 0x221   : > { %v2272_v46 = vpop.f32.mrf.mxu1  ;;  %v1441_v49 = vpop.f32.mrf.mxu0 }
 0x222   : > { %2980 = vst [vmem:[%s4331_s0 + $0x278] sm:$0xff] %v2852_v42  ;;  %v2853_v47 = vadd.f32 %v2656_v45, %v2271_v43  ;;  %v2273_v48 = vadd.f32 %v2272_v46, %v1439_v44  ;;  %v2691_v44 = vpop.permute.xlu1 %2690 }
 0x223   : > { %v2274_v50 = vpop.f32.mrf.mxu1  ;;  %v1443_v53 = vpop.f32.mrf.mxu0 }
 0x224   : > { %2981 = vst [vmem:[%s4331_s0 + $0x280] sm:$0xff] %v2853_v47  ;;  %v2854_v51 = vadd.f32 %v2656_v45, %v2273_v48  ;;  %v2275_v52 = vadd.f32 %v2274_v50, %v1441_v49 }
 0x225   : > { %v2276_v55 = vpop.f32.mrf.mxu1  ;;  %v1447_v58 = vpop.f32.mrf.mxu0 }
 0x226   : > { %2982 = vst [vmem:[%s4331_s0 + $0x288] sm:$0xff] %v2854_v51  ;;  %v2855_v56 = vadd.f32 %v2661_v54, %v2275_v52  ;;  %v2277_v57 = vadd.f32 %v2276_v55, %v1443_v53  ;;  %v2696_v53 = vpop.permute.xlu0 %2695 }
 0x227   : > { %v2280_v59 = vpop.f32.mrf.mxu1  ;;  %v1449_v62 = vpop.f32.mrf.mxu0 }
 0x228   : > { %2983 = vst [vmem:[%s4331_s0 + $0x290] sm:$0xff] %v2855_v56  ;;  %v2856_v60 = vadd.f32 %v2661_v54, %v2277_v57  ;;  %v2281_v61 = vadd.f32 %v2280_v59, %v1447_v58 }
 0x229   : > { %v2282_v0 = vpop.f32.mrf.mxu1  ;;  %v1451_v3 = vpop.f32.mrf.mxu0 }
 0x22a   : > { %2984 = vst [vmem:[%s4331_s0 + $0x298] sm:$0xff] %v2856_v60  ;;  %v2857_v1 = vadd.f32 %v2666_v63, %v2281_v61  ;;  %v2283_v2 = vadd.f32 %v2282_v0, %v1449_v62  ;;  %v2701_v62 = vpop.permute.xlu1 %2700 }
 0x22b   : > { %v2284_v4 = vpop.f32.mrf.mxu1  ;;  %v1453_v7 = vpop.f32.mrf.mxu0 }
 0x22c   : > { %2985 = vst [vmem:[%s4331_s0 + $0x2a0] sm:$0xff] %v2857_v1  ;;  %v2858_v5 = vadd.f32 %v2666_v63, %v2283_v2  ;;  %v2285_v6 = vadd.f32 %v2284_v4, %v1451_v3 }
 0x22d   : > { %v2286_v9 = vpop.f32.mrf.mxu1  ;;  %v1457_v12 = vpop.f32.mrf.mxu0 }
 0x22e   : > { %2986 = vst [vmem:[%s4331_s0 + $0x2a8] sm:$0xff] %v2858_v5  ;;  %v2859_v10 = vadd.f32 %v2671_v8, %v2285_v6  ;;  %v2287_v11 = vadd.f32 %v2286_v9, %v1453_v7  ;;  %v2706_v7 = vpop.permute.xlu0 %2705 }
 0x22f   : > { %v2290_v13 = vpop.f32.mrf.mxu1  ;;  %v1459_v16 = vpop.f32.mrf.mxu0 }
 0x230   : > { %2987 = vst [vmem:[%s4331_s0 + $0x2b0] sm:$0xff] %v2859_v10  ;;  %v2860_v14 = vadd.f32 %v2671_v8, %v2287_v11  ;;  %v2291_v15 = vadd.f32 %v2290_v13, %v1457_v12 }
 0x231   : > { %v2292_v18 = vpop.f32.mrf.mxu1  ;;  %v1461_v21 = vpop.f32.mrf.mxu0 }
 0x232   : > { %2988 = vst [vmem:[%s4331_s0 + $0x2b8] sm:$0xff] %v2860_v14  ;;  %v2861_v19 = vadd.f32 %v2676_v17, %v2291_v15  ;;  %v2293_v20 = vadd.f32 %v2292_v18, %v1459_v16  ;;  %v2711_v16 = vpop.permute.xlu1 %2710 }
 0x233   : > { %v2294_v22 = vpop.f32.mrf.mxu1  ;;  %v1463_v25 = vpop.f32.mrf.mxu0 }
 0x234   : > { %2989 = vst [vmem:[%s4331_s0 + $0x2c0] sm:$0xff] %v2861_v19  ;;  %v2862_v23 = vadd.f32 %v2676_v17, %v2293_v20  ;;  %v2295_v24 = vadd.f32 %v2294_v22, %v1461_v21 }
 0x235   : > { %v2296_v27 = vpop.f32.mrf.mxu1  ;;  %v1467_v30 = vpop.f32.mrf.mxu0 }
 0x236   : > { %2990 = vst [vmem:[%s4331_s0 + $0x2c8] sm:$0xff] %v2862_v23  ;;  %v2863_v28 = vadd.f32 %v2681_v26, %v2295_v24  ;;  %v2297_v29 = vadd.f32 %v2296_v27, %v1463_v25  ;;  %v2716_v25 = vpop.permute.xlu0 %2715 }
 0x237   : > { %v2300_v31 = vpop.f32.mrf.mxu1  ;;  %v1469_v34 = vpop.f32.mrf.mxu0 }
 0x238   : > { %2991 = vst [vmem:[%s4331_s0 + $0x2d0] sm:$0xff] %v2863_v28  ;;  %v2864_v32 = vadd.f32 %v2681_v26, %v2297_v29  ;;  %v2301_v33 = vadd.f32 %v2300_v31, %v1467_v30 }
 0x239   : > { %v2302_v36 = vpop.f32.mrf.mxu1  ;;  %v1471_v39 = vpop.f32.mrf.mxu0 }
 0x23a   : > { %2992 = vst [vmem:[%s4331_s0 + $0x2d8] sm:$0xff] %v2864_v32  ;;  %v2865_v37 = vadd.f32 %v2686_v35, %v2301_v33  ;;  %v2303_v38 = vadd.f32 %v2302_v36, %v1469_v34  ;;  %v2721_v34 = vpop.permute.xlu1 %2720 }
 0x23b   : > { %v2304_v40 = vpop.f32.mrf.mxu1  ;;  %v1473_v43 = vpop.f32.mrf.mxu0 }
 0x23c   : > { %2993 = vst [vmem:[%s4331_s0 + $0x2e0] sm:$0xff] %v2865_v37  ;;  %v2866_v41 = vadd.f32 %v2686_v35, %v2303_v38  ;;  %v2305_v42 = vadd.f32 %v2304_v40, %v1471_v39 }
 0x23d   : > { %v2306_v45 = vpop.f32.mrf.mxu1  ;;  %v1477_v48 = vpop.f32.mrf.mxu0 }
 0x23e   : > { %2994 = vst [vmem:[%s4331_s0 + $0x2e8] sm:$0xff] %v2866_v41  ;;  %v2867_v46 = vadd.f32 %v2691_v44, %v2305_v42  ;;  %v2307_v47 = vadd.f32 %v2306_v45, %v1473_v43  ;;  %v2726_v43 = vpop.permute.xlu0 %2725 }
 0x23f   : > { %v2310_v49 = vpop.f32.mrf.mxu1  ;;  %v1479_v52 = vpop.f32.mrf.mxu0 }
 0x240   : > { %2995 = vst [vmem:[%s4331_s0 + $0x2f0] sm:$0xff] %v2867_v46  ;;  %v2868_v50 = vadd.f32 %v2691_v44, %v2307_v47  ;;  %v2311_v51 = vadd.f32 %v2310_v49, %v1477_v48 }
 0x241   : > { %v2312_v54 = vpop.f32.mrf.mxu1  ;;  %v1481_v57 = vpop.f32.mrf.mxu0 }
 0x242   : > { %2996 = vst [vmem:[%s4331_s0 + $0x2f8] sm:$0xff] %v2868_v50  ;;  %v2869_v55 = vadd.f32 %v2696_v53, %v2311_v51  ;;  %v2313_v56 = vadd.f32 %v2312_v54, %v1479_v52  ;;  %v2731_v52 = vpop.permute.xlu1 %2730 }
 0x243   : > { %v2314_v58 = vpop.f32.mrf.mxu1  ;;  %v1483_v61 = vpop.f32.mrf.mxu0 }
 0x244   : > { %2997 = vst [vmem:[%s4331_s0 + $0x300] sm:$0xff] %v2869_v55  ;;  %v2870_v59 = vadd.f32 %v2696_v53, %v2313_v56  ;;  %v2315_v60 = vadd.f32 %v2314_v58, %v1481_v57 }
 0x245   : > { %v2316_v63 = vpop.f32.mrf.mxu1  ;;  %v1487_v2 = vpop.f32.mrf.mxu0 }
 0x246   : > { %2998 = vst [vmem:[%s4331_s0 + $0x308] sm:$0xff] %v2870_v59  ;;  %v2871_v0 = vadd.f32 %v2701_v62, %v2315_v60  ;;  %v2317_v1 = vadd.f32 %v2316_v63, %v1483_v61  ;;  %v2736_v61 = vpop.permute.xlu0 %2735 }
 0x247   : > { %v2320_v3 = vpop.f32.mrf.mxu1  ;;  %v1489_v6 = vpop.f32.mrf.mxu0 }
 0x248   : > { %2999 = vst [vmem:[%s4331_s0 + $0x310] sm:$0xff] %v2871_v0  ;;  %v2872_v4 = vadd.f32 %v2701_v62, %v2317_v1  ;;  %v2321_v5 = vadd.f32 %v2320_v3, %v1487_v2 }
 0x249   : > { %v2322_v8 = vpop.f32.mrf.mxu1  ;;  %v1491_v11 = vpop.f32.mrf.mxu0 }
 0x24a   : > { %3000 = vst [vmem:[%s4331_s0 + $0x318] sm:$0xff] %v2872_v4  ;;  %v2873_v9 = vadd.f32 %v2706_v7, %v2321_v5  ;;  %v2323_v10 = vadd.f32 %v2322_v8, %v1489_v6  ;;  %v2741_v6 = vpop.permute.xlu1 %2740 }
 0x24b   : > { %v2324_v12 = vpop.f32.mrf.mxu1  ;;  %v1493_v15 = vpop.f32.mrf.mxu0 }
 0x24c   : > { %3001 = vst [vmem:[%s4331_s0 + $0x320] sm:$0xff] %v2873_v9  ;;  %v2874_v13 = vadd.f32 %v2706_v7, %v2323_v10  ;;  %v2325_v14 = vadd.f32 %v2324_v12, %v1491_v11 }
 0x24d   : > { %v2326_v17 = vpop.f32.mrf.mxu1  ;;  %v1497_v20 = vpop.f32.mrf.mxu0 }
 0x24e   : > { %3002 = vst [vmem:[%s4331_s0 + $0x328] sm:$0xff] %v2874_v13  ;;  %v2875_v18 = vadd.f32 %v2711_v16, %v2325_v14  ;;  %v2327_v19 = vadd.f32 %v2326_v17, %v1493_v15  ;;  %v2746_v15 = vpop.permute.xlu0 %2745 }
 0x24f   : > { %v2330_v21 = vpop.f32.mrf.mxu1  ;;  %v1499_v24 = vpop.f32.mrf.mxu0 }
 0x250   : > { %3003 = vst [vmem:[%s4331_s0 + $0x330] sm:$0xff] %v2875_v18  ;;  %v2876_v22 = vadd.f32 %v2711_v16, %v2327_v19  ;;  %v2331_v23 = vadd.f32 %v2330_v21, %v1497_v20 }
 0x251   : > { %v2332_v26 = vpop.f32.mrf.mxu1  ;;  %v1501_v29 = vpop.f32.mrf.mxu0 }
 0x252   : > { %3004 = vst [vmem:[%s4331_s0 + $0x338] sm:$0xff] %v2876_v22  ;;  %v2877_v27 = vadd.f32 %v2716_v25, %v2331_v23  ;;  %v2333_v28 = vadd.f32 %v2332_v26, %v1499_v24  ;;  %v2751_v24 = vpop.permute.xlu1 %2750 }
 0x253   : > { %v2334_v30 = vpop.f32.mrf.mxu1  ;;  %v1503_v33 = vpop.f32.mrf.mxu0 }
 0x254   : > { %3005 = vst [vmem:[%s4331_s0 + $0x340] sm:$0xff] %v2877_v27  ;;  %v2878_v31 = vadd.f32 %v2716_v25, %v2333_v28  ;;  %v2335_v32 = vadd.f32 %v2334_v30, %v1501_v29 }
 0x255   : > { %v2336_v35 = vpop.f32.mrf.mxu1  ;;  %v1507_v38 = vpop.f32.mrf.mxu0 }
 0x256   : > { %3006 = vst [vmem:[%s4331_s0 + $0x348] sm:$0xff] %v2878_v31  ;;  %v2879_v36 = vadd.f32 %v2721_v34, %v2335_v32  ;;  %v2337_v37 = vadd.f32 %v2336_v35, %v1503_v33  ;;  %v2756_v33 = vpop.permute.xlu0 %2755 }
 0x257   : > { %v2340_v39 = vpop.f32.mrf.mxu1  ;;  %v1509_v42 = vpop.f32.mrf.mxu0 }
 0x258   : > { %3007 = vst [vmem:[%s4331_s0 + $0x350] sm:$0xff] %v2879_v36  ;;  %v2880_v40 = vadd.f32 %v2721_v34, %v2337_v37  ;;  %v2341_v41 = vadd.f32 %v2340_v39, %v1507_v38 }
 0x259   : > { %v2342_v44 = vpop.f32.mrf.mxu1  ;;  %v1511_v47 = vpop.f32.mrf.mxu0 }
 0x25a   : > { %3008 = vst [vmem:[%s4331_s0 + $0x358] sm:$0xff] %v2880_v40  ;;  %v2881_v45 = vadd.f32 %v2726_v43, %v2341_v41  ;;  %v2343_v46 = vadd.f32 %v2342_v44, %v1509_v42  ;;  %v2761_v42 = vpop.permute.xlu1 %2760 }
 0x25b   : > { %v2344_v48 = vpop.f32.mrf.mxu1  ;;  %v1513_v51 = vpop.f32.mrf.mxu0 }
 0x25c   : > { %3009 = vst [vmem:[%s4331_s0 + $0x360] sm:$0xff] %v2881_v45  ;;  %v2882_v49 = vadd.f32 %v2726_v43, %v2343_v46  ;;  %v2345_v50 = vadd.f32 %v2344_v48, %v1511_v47 }
 0x25d   : > { %v2346_v53 = vpop.f32.mrf.mxu1  ;;  %v1517_v56 = vpop.f32.mrf.mxu0 }
 0x25e   : > { %3010 = vst [vmem:[%s4331_s0 + $0x368] sm:$0xff] %v2882_v49  ;;  %v2883_v54 = vadd.f32 %v2731_v52, %v2345_v50  ;;  %v2347_v55 = vadd.f32 %v2346_v53, %v1513_v51  ;;  %v2766_v51 = vpop.permute.xlu0 %2765 }
 0x25f   : > { %v2350_v57 = vpop.f32.mrf.mxu1  ;;  %v1519_v60 = vpop.f32.mrf.mxu0 }
 0x260   : > { %3011 = vst [vmem:[%s4331_s0 + $0x370] sm:$0xff] %v2883_v54  ;;  %v2884_v58 = vadd.f32 %v2731_v52, %v2347_v55  ;;  %v2351_v59 = vadd.f32 %v2350_v57, %v1517_v56 }
 0x261   : > { %v2352_v62 = vpop.f32.mrf.mxu1  ;;  %v1521_v1 = vpop.f32.mrf.mxu0 }
 0x262   : > { %3012 = vst [vmem:[%s4331_s0 + $0x378] sm:$0xff] %v2884_v58  ;;  %v2885_v63 = vadd.f32 %v2736_v61, %v2351_v59  ;;  %v2353_v0 = vadd.f32 %v2352_v62, %v1519_v60  ;;  %v2771_v60 = vpop.permute.xlu1 %2770 }
 0x263   : > { %v2354_v2 = vpop.f32.mrf.mxu1  ;;  %v1523_v5 = vpop.f32.mrf.mxu0 }
 0x264   : > { %3013 = vst [vmem:[%s4331_s0 + $0x380] sm:$0xff] %v2885_v63  ;;  %v2886_v3 = vadd.f32 %v2736_v61, %v2353_v0  ;;  %v2355_v4 = vadd.f32 %v2354_v2, %v1521_v1 }
 0x265   : > { %v2356_v7 = vpop.f32.mrf.mxu1  ;;  %v1527_v10 = vpop.f32.mrf.mxu0 }
 0x266   : > { %3014 = vst [vmem:[%s4331_s0 + $0x388] sm:$0xff] %v2886_v3  ;;  %v2887_v8 = vadd.f32 %v2741_v6, %v2355_v4  ;;  %v2357_v9 = vadd.f32 %v2356_v7, %v1523_v5 }
 0x267   : > { %v2360_v11 = vpop.f32.mrf.mxu1  ;;  %v1529_v14 = vpop.f32.mrf.mxu0 }
 0x268   : > { %3015 = vst [vmem:[%s4331_s0 + $0x390] sm:$0xff] %v2887_v8  ;;  %v2888_v12 = vadd.f32 %v2741_v6, %v2357_v9  ;;  %v2361_v13 = vadd.f32 %v2360_v11, %v1527_v10 }
 0x269   : > { %v2362_v16 = vpop.f32.mrf.mxu1  ;;  %v1531_v19 = vpop.f32.mrf.mxu0 }
 0x26a   : > { %3016 = vst [vmem:[%s4331_s0 + $0x398] sm:$0xff] %v2888_v12  ;;  %v2889_v17 = vadd.f32 %v2746_v15, %v2361_v13  ;;  %v2363_v18 = vadd.f32 %v2362_v16, %v1529_v14 }
 0x26b   : > { %v2364_v20 = vpop.f32.mrf.mxu1  ;;  %v1533_v23 = vpop.f32.mrf.mxu0 }
 0x26c   : > { %3017 = vst [vmem:[%s4331_s0 + $0x3a0] sm:$0xff] %v2889_v17  ;;  %v2890_v21 = vadd.f32 %v2746_v15, %v2363_v18  ;;  %v2365_v22 = vadd.f32 %v2364_v20, %v1531_v19 }
 0x26d   : > { %v2366_v25 = vpop.f32.mrf.mxu1  ;;  %v1537_v28 = vpop.f32.mrf.mxu0 }
 0x26e   : > { %3018 = vst [vmem:[%s4331_s0 + $0x3a8] sm:$0xff] %v2890_v21  ;;  %v2891_v26 = vadd.f32 %v2751_v24, %v2365_v22  ;;  %v2367_v27 = vadd.f32 %v2366_v25, %v1533_v23 }
 0x26f   : > { %v2370_v29 = vpop.f32.mrf.mxu1  ;;  %v1539_v32 = vpop.f32.mrf.mxu0 }
 0x270   : > { %3019 = vst [vmem:[%s4331_s0 + $0x3b0] sm:$0xff] %v2891_v26  ;;  %v2892_v30 = vadd.f32 %v2751_v24, %v2367_v27  ;;  %v2371_v31 = vadd.f32 %v2370_v29, %v1537_v28 }
 0x271   : > { %v2372_v34 = vpop.f32.mrf.mxu1  ;;  %v1541_v37 = vpop.f32.mrf.mxu0 }
 0x272   : > { %3020 = vst [vmem:[%s4331_s0 + $0x3b8] sm:$0xff] %v2892_v30  ;;  %v2893_v35 = vadd.f32 %v2756_v33, %v2371_v31  ;;  %v2373_v36 = vadd.f32 %v2372_v34, %v1539_v32 }
 0x273   : > { %v2374_v38 = vpop.f32.mrf.mxu1  ;;  %v1543_v41 = vpop.f32.mrf.mxu0 }
 0x274   : > { %3021 = vst [vmem:[%s4331_s0 + $0x3c0] sm:$0xff] %v2893_v35  ;;  %v2894_v39 = vadd.f32 %v2756_v33, %v2373_v36  ;;  %v2375_v40 = vadd.f32 %v2374_v38, %v1541_v37 }
 0x275   : > { %v2376_v43 = vpop.f32.mrf.mxu1  ;;  %v1547_v46 = vpop.f32.mrf.mxu0 }
 0x276   : > { %3022 = vst [vmem:[%s4331_s0 + $0x3c8] sm:$0xff] %v2894_v39  ;;  %v2895_v44 = vadd.f32 %v2761_v42, %v2375_v40  ;;  %v2377_v45 = vadd.f32 %v2376_v43, %v1543_v41 }
 0x277   : > { %v2380_v47 = vpop.f32.mrf.mxu1  ;;  %v1549_v50 = vpop.f32.mrf.mxu0 }
 0x278   : > { %3023 = vst [vmem:[%s4331_s0 + $0x3d0] sm:$0xff] %v2895_v44  ;;  %v2896_v48 = vadd.f32 %v2761_v42, %v2377_v45  ;;  %v2381_v49 = vadd.f32 %v2380_v47, %v1547_v46 }
 0x279   : > { %v2382_v52 = vpop.f32.mrf.mxu1  ;;  %v1551_v55 = vpop.f32.mrf.mxu0 }
 0x27a   : > { %3024 = vst [vmem:[%s4331_s0 + $0x3d8] sm:$0xff] %v2896_v48  ;;  %v2897_v53 = vadd.f32 %v2766_v51, %v2381_v49  ;;  %v2383_v54 = vadd.f32 %v2382_v52, %v1549_v50 }
 0x27b   : > { %v2384_v56 = vpop.f32.mrf.mxu1  ;;  %v1553_v59 = vpop.f32.mrf.mxu0 }
 0x27c   : > { %3025 = vst [vmem:[%s4331_s0 + $0x3e0] sm:$0xff] %v2897_v53  ;;  %v2898_v57 = vadd.f32 %v2766_v51, %v2383_v54  ;;  %v2385_v58 = vadd.f32 %v2384_v56, %v1551_v55 }
 0x27d   : > { %v2386_v61 = vpop.f32.mrf.mxu1 }
 0x27e   : > { %3026 = vst [vmem:[%s4331_s0 + $0x3e8] sm:$0xff] %v2898_v57  ;;  %v2899_v62 = vadd.f32 %v2771_v60, %v2385_v58  ;;  %v2387_v63 = vadd.f32 %v2386_v61, %v1553_v59 }
 0x280   : > { %3027 = vst [vmem:[%s4331_s0 + $0x3f0] sm:$0xff] %v2899_v62  ;;  %v2900_v0 = vadd.f32 %v2771_v60, %v2387_v63 }
 0x282   : > { %3028 = vst [vmem:[%s4331_s0 + $0x3f8] sm:$0xff] %v2900_v0 }
 0x283   : > { %3836 = shalt.err (!%p3833_p10)
}
 0x284   : > { %s3837_s10 = scalar_lea.hbm %s4487_s22, 16384  ;;  %s3841_s15 = scalar_lea.hbm %s4541_s7, 32768 }
 0x285   : > { %p3838_p4 = scmp.ne.s32.totalorder %s4487_s22, %s3837_s10  ;;  %p3842_p2 = scmp.lt.s32.totalorder %s4487_s22, %s4541_s7 }
 0x286   : > { %p3843_p12 = scmp.lt.s32.totalorder %s3841_s15, %s3837_s10 }
 0x287   : > { %p3839_p8 = pnand %p3838_p4, %p4567_p13 }
 0x288   : > { %p3844_p7 = por %p3843_p12, %p3842_p2 }
 0x289   : > { %p3840_p9 = pneg %p3839_p8 }
 0x28b   : > { %p3845_p1 = pnand %p3844_p7, %p3840_p9 }
 0x28d   : > { %3848 = shalt.err (!%p3845_p1)
}
 0x28e   : > { %s3910_s16 = smov 256   ;;  %s3911_s30 = smov 16  }
 0x28f   : > { %3423 = dma.vmem_to_hbm [thread:$0]  (%p4567_p13), %s4489_s19, 16384, %s4487_s22, %s3030_s28, %s3910_s16, %s3910_s16, %s3911_s30  }
 0x290 PF: > { %s3059_s21 = sand.u32 1, %s3887_s24   ;;  %p4568_p0 = scmp.ne.s32.totalorder %s4550_s8, 0 }
 0x291   : > { %p4569_p11 = scmp.ge.s32.totalorder %s3899_s27, 2  ;;  %s3060_s13 = scalar_lea.sflag [#allocation4], %s3059_s21 }
 0x293   : > { %p3443_p5 = pnand %p4569_p11, %p4568_p0 }
 0x295   : > { %p3444_p6 = pneg %p3443_p5 }
 0x297   : > { %3882 = dma.done.wait (%p3444_p6), %s3060_s13, 16384  }
 0x298   : > { %3884 = vsyncadd (%p3444_p6), %s3060_s13, 4294950912  ;;  %p20_p3 = scmp.ge.s32.totalorder %s4052_s12, 4   ;;  %s4570_s24 = smov %s3891_s25 }
 0x299   : > { %s4571_s25 = smov %s3895_s26  ;;  %s4572_s26 = smov %s4068_s29 }
 0x29a   : > { %s4573_s27 = smov %s4052_s12  ;;  %22 = sbr.rel (!%p20_p3) target bundleno = 8 (0x8), region = 114 }
 0x29f   :  { %3065 = vsyncpa [#allocation3], 1 }
 0x2a0   :  { %3067 = vsyncpa [#allocation3 + $0x1], 1 }
 0x2a1   :  { %3068 = vsyncpa [#allocation6], 1 }
 0x2a2   :  { %3069 = vsyncpa [#allocation9], 1 }
 0x2a3   :  { %3070 = vsyncpa [#allocation4], 1 }
 0x2a4   :  { %3072 = vsyncpa [#allocation4 + $0x1], 1 }

</bundles_post_ra>
